<compile_context>
chip_gen: v7x
topology: tpu7x:2x2x1
jax: 0.10.0
libtpu: 0.0.40
codegen_flags: <defaults>
</compile_context>

<pallas_src>
import functools

import jax
import jax.numpy as jnp
from jax import lax
from jax.experimental import pallas as pl
from jax.experimental.pallas import tpu as pltpu

_MASK_BIG = 1e30  # finite additive mask; exp(-1e30 - m) underflows to exactly 0


def _default_vmem_limit_bytes():
    try:
        cap = int(pltpu.get_tpu_info().vmem_capacity_bytes)
    except Exception:
        cap = 64 * 1024 * 1024
    return int(min(100 * 1024 * 1024, cap * 3 // 4))


def _leaky_relu(s, alpha):
    # 0 < alpha < 1  =>  max(s, alpha*s) == LeakyReLU(s): mul + max, no select.
    return jnp.maximum(s, alpha * s)


def _elu(x):
    return jnp.where(x > 0, x, jnp.exp(jnp.minimum(x, 0.0)) - 1.0)


def _masked_softmax_agg(bias, s, h_aug_bf16):
    """Edge-masked softmax of exp(-s) applied to [feat | 1] in ONE matmul.

    bias = (adj - 1) * 1e30 (0 on edges, -1e30 elsewhere).  The row max is
    exact over edges, masked lanes underflow to 0, and the softmax denominator
    rides along as the last (ones) column of h_aug, so normalisation needs no
    second MXU pass.  Returns the un-normalised (rows, d_aug) aggregate, f32.
    """
    logits = bias - s                              # (rows, N)
    m = jnp.max(logits, axis=1, keepdims=True)     # finite iff row has >=1 edge
    e = jnp.exp(logits - m).astype(jnp.bfloat16)   # <= 1; non-edges exactly 0
    return jnp.dot(e, h_aug_bf16, preferred_element_type=jnp.float32)


def _project_kernel(x_ref, w_ref, b_ref, out_ref):
    # h_aug = x @ W_aug + b_aug ; b_aug plants the per-head ones column used by
    # the attention kernels to fuse rowsum into the aggregation matmul.
    out_ref[...] = (
        jnp.dot(x_ref[...], w_ref[...], preferred_element_type=jnp.float32)
        + b_ref[...])


def _layer1_kernel(adj_ref, h_rows_ref, h_full_ref, a_src_ref, a_dst_ref,
                   w_out_ref, out_ref, *, alpha, nheads):
    tm = adj_ref.shape[0]
    d_aug = a_src_ref.shape[0] // nheads            # nhid + 1 (ones column)
    nclass = out_ref.shape[1] - 1

    adj = adj_ref[...].astype(jnp.float32)          # (tm, N) 0/1
    bias = (adj - 1.0) * _MASK_BIG                  # shared across all H heads
    h_full = h_full_ref[...]                        # (N, H*(nhid+1)) f32
    h_rows = h_rows_ref[...]                        # (tm, H*(nhid+1)) f32
    h_full_bf = h_full.astype(jnp.bfloat16)
    w_out = w_out_ref[...]                          # (H*(nhid+1), nclass)

    # Batched per-head attention projections: 2 matmuls instead of 2H matvecs.
    f_src = jnp.dot(h_rows, a_src_ref[...],
                    preferred_element_type=jnp.float32)            # (tm, H)
    f_dst = lax.dot_general(a_dst_ref[...], h_full,
                            (((1,), (1,)), ((), ())),
                            preferred_element_type=jnp.float32)    # (H, N)

    h2 = jnp.zeros((tm, nclass), jnp.float32)
    for h in range(nheads):                         # unrolled at trace time
        s = _leaky_relu(f_src[:, h:h + 1] + f_dst[h:h + 1, :], alpha)  # (tm, N)
        agg = _masked_softmax_agg(
            bias, s, h_full_bf[:, h * d_aug:(h + 1) * d_aug])          # (tm, nhid+1)
        rowsum = agg[:, d_aug - 1:d_aug]            # fused ones-column rowsum
        hp = agg * pl.reciprocal(jnp.maximum(rowsum, 1e-20), approx=True)
        hp = _elu(hp)                               # concat=True head -> ELU
        # torch.cat(dim=1) @ W_out == per-head block-sum (ones row of W is 0).
        h2 = h2 + jnp.dot(hp, w_out[h * d_aug:(h + 1) * d_aug, :],
                          preferred_element_type=jnp.float32)
    # Append the ones column layer 2 uses for its own fused rowsum.
    out_ref[...] = jnp.concatenate(
        [h2, jnp.ones((tm, 1), jnp.float32)], axis=1)


def _layer2_kernel(adj_ref, h_rows_ref, h_full_ref, a_src_ref, a_dst_ref,
                   out_ref, *, alpha):
    nclass = out_ref.shape[1]

    adj = adj_ref[...].astype(jnp.float32)
    bias = (adj - 1.0) * _MASK_BIG
    h_full = h_full_ref[...]                        # (N, nclass+1), last col = 1
    h_rows = h_rows_ref[...]                        # (tm, nclass+1)

    f_src = jnp.dot(h_rows, a_src_ref[...],
                    preferred_element_type=jnp.float32)            # (tm, 1)
    f_dst = lax.dot_general(a_dst_ref[...], h_full,
                            (((1,), (1,)), ((), ())),
                            preferred_element_type=jnp.float32)    # (1, N)
    s = _leaky_relu(f_src + f_dst, alpha)                          # (tm, N)
    agg = _masked_softmax_agg(bias, s, h_full.astype(jnp.bfloat16))
    rowsum = agg[:, nclass:nclass + 1]
    hp = agg[:, :nclass] * pl.reciprocal(jnp.maximum(rowsum, 1e-20), approx=True)
    hp = _elu(hp)                                   # F.elu(out_att(...))
    m = jnp.max(hp, axis=1, keepdims=True)
    lse = m + jnp.log(jnp.sum(jnp.exp(hp - m), axis=1, keepdims=True))
    out_ref[...] = hp - lse                         # log_softmax(dim=1)


def spgat_forward(x, adj, params, *, alpha, row_tile=256):
    """SpGAT forward (eval mode). Returns (N, nclass) log-probabilities."""
    w_heads = params["W_heads"]          # (H, F_in, nhid)
    a_heads = params["a_heads"]          # (H, 1, 2*nhid)
    w_out = params["W_out"]              # (H*nhid, nclass)
    a_out = params["a_out"]              # (1, 2*nclass)

    nheads, f_in, nhid = w_heads.shape
    nclass = w_out.shape[1]
    n = x.shape[0]
    d_aug = nhid + 1
    hd = nheads * d_aug

    # ---- host-side packing (per-head "ones" column + block-diagonal a's) ----
    w_aug = jnp.concatenate(
        [jnp.transpose(w_heads, (1, 0, 2)),
         jnp.zeros((f_in, nheads, 1), w_heads.dtype)], axis=2).reshape(f_in, hd)
    b_aug = jnp.concatenate(
        [jnp.zeros((nheads, nhid), jnp.float32),
         jnp.ones((nheads, 1), jnp.float32)], axis=1).reshape(1, hd)
    eye_h = jnp.eye(nheads, dtype=jnp.float32)
    a_src = jnp.concatenate(
        [a_heads[:, 0, :nhid], jnp.zeros((nheads, 1), a_heads.dtype)], axis=1)
    a_dst = jnp.concatenate(
        [a_heads[:, 0, nhid:], jnp.zeros((nheads, 1), a_heads.dtype)], axis=1)
    a_src_bd = (a_src[:, :, None] * eye_h[:, None, :]).reshape(hd, nheads)
    a_dst_bd = (eye_h[:, :, None] * a_dst[None, :, :]).reshape(nheads, hd)
    w_out_aug = jnp.concatenate(
        [w_out.reshape(nheads, nhid, nclass),
         jnp.zeros((nheads, 1, nclass), w_out.dtype)], axis=1).reshape(hd, nclass)
    a2_src = jnp.concatenate(
        [a_out[0, :nclass], jnp.zeros((1,), a_out.dtype)]).reshape(nclass + 1, 1)
    a2_dst = jnp.concatenate(
        [a_out[0, nclass:], jnp.zeros((1,), a_out.dtype)]).reshape(1, nclass + 1)

    # adj is only a !=0 mask: bf16 halves the dominant N^2 HBM/VMEM traffic.
    adj_bf16 = adj.astype(jnp.bfloat16)

    tm = row_tile if (row_tile <= n and n % row_tile == 0) else n
    grid = (n // tm,)
    cparams = pltpu.CompilerParams(
        dimension_semantics=("parallel",),            # v7x megacore over row tiles
        vmem_limit_bytes=_default_vmem_limit_bytes())

    row = lambda i: (i, 0)
    full = lambda i: (0, 0)

    # ---- stage 1: h_aug = [x @ W_h | 1] for every head, lane-dense ----------
    h_aug = pl.pallas_call(
        _project_kernel,
        grid=grid,
        in_specs=[pl.BlockSpec((tm, f_in), row),
                  pl.BlockSpec((f_in, hd), full),
                  pl.BlockSpec((1, hd), full)],
        out_specs=pl.BlockSpec((tm, hd), row),
        out_shape=jax.ShapeDtypeStruct((n, hd), jnp.float32),
        compiler_params=cparams,
        cost_estimate=pl.CostEstimate(
            flops=2 * n * f_in * hd, transcendentals=0,
            bytes_accessed=4 * (n * f_in + f_in * hd + n * hd)),
    )(x, w_aug, b_aug)

    # ---- stage 2: H attention heads + ELU + cat(dim=1) @ W_out block-sum ----
    layer1 = functools.partial(_layer1_kernel, alpha=alpha, nheads=nheads)
    h2_aug = pl.pallas_call(
        layer1,
        grid=grid,
        in_specs=[pl.BlockSpec((tm, n), row),          # adj row tile (bf16)
                  pl.BlockSpec((tm, hd), row),         # h_aug, rows of this tile
                  pl.BlockSpec((n, hd), full),         # h_aug, all nodes (resident)
                  pl.BlockSpec((hd, nheads), full),
                  pl.BlockSpec((nheads, hd), full),
                  pl.BlockSpec((hd, nclass), full)],
        out_specs=pl.BlockSpec((tm, nclass + 1), row),
        out_shape=jax.ShapeDtypeStruct((n, nclass + 1), jnp.float32),
        compiler_params=cparams,
        cost_estimate=pl.CostEstimate(
            flops=2 * nheads * n * n * (nhid + 2),
            transcendentals=nheads * n * n,
            bytes_accessed=2 * n * n + 4 * (2 * n * hd + n * (nclass + 1))),
    )(adj_bf16, h_aug, h_aug, a_src_bd, a_dst_bd, w_out_aug)

    # ---- stage 3: output attention head + ELU + log_softmax -----------------
    layer2 = functools.partial(_layer2_kernel, alpha=alpha)
    out = pl.pallas_call(
        layer2,
        grid=grid,
        in_specs=[pl.BlockSpec((tm, n), row),
                  pl.BlockSpec((tm, nclass + 1), row),
                  pl.BlockSpec((n, nclass + 1), full),
                  pl.BlockSpec((nclass + 1, 1), full),
                  pl.BlockSpec((1, nclass + 1), full)],
        out_specs=pl.BlockSpec((tm, nclass), row),
        out_shape=jax.ShapeDtypeStruct((n, nclass), jnp.float32),
        compiler_params=cparams,
        cost_estimate=pl.CostEstimate(
            flops=2 * n * n * (nclass + 2),
            transcendentals=2 * n * n,
            bytes_accessed=2 * n * n + 4 * (2 * n * (nclass + 1) + n * nclass)),
    )(adj_bf16, h2_aug, h2_aug, a2_src, a2_dst)
    return out


if __name__ == "__main__":
    N, nfeat, nhid, nclass, nheads = 64, 16, 8, 8, 4
    alpha = 0.2
    dropout = 0.6  # only affects training mode; this forward is eval mode

    key = jax.random.PRNGKey(0)
    k_x, k_adj, k_w, k_a, k_wo, k_ao = jax.random.split(key, 6)

    x = jax.random.normal(k_x, (N, nfeat), dtype=jnp.float32)
    adj_rand = (jax.random.uniform(k_adj, (N, N)) < 0.1).astype(jnp.float32)
    adj = jnp.maximum(adj_rand, jnp.eye(N, dtype=jnp.float32))  # self loops

    def xavier_normal(k, shape, gain=1.414):
        fan_in, fan_out = shape[-2], shape[-1]
        std = gain * (2.0 / (fan_in + fan_out)) ** 0.5
        return std * jax.random.normal(k, shape, dtype=jnp.float32)

    params = {
        "W_heads": xavier_normal(k_w, (nheads, nfeat, nhid)),
        "a_heads": xavier_normal(k_a, (nheads, 1, 2 * nhid)),
        "W_out": xavier_normal(k_wo, (nhid * nheads, nclass)),
        "a_out": xavier_normal(k_ao, (1, 2 * nclass)),
    }

    # row_tile=16 -> a 4-step "parallel" row-tile grid, exercising the tiling.
    fwd = jax.jit(functools.partial(spgat_forward, alpha=alpha, row_tile=16))
    out = jax.block_until_ready(fwd(x, adj, params))
    assert out.shape == (N, nclass)
    assert bool(jnp.all(jnp.isfinite(out)))
    # log_softmax rows must exponentiate to ~1.
    row_prob = jnp.sum(jnp.exp(out), axis=1)
    assert bool(jnp.all(jnp.abs(row_prob - 1.0) < 1e-3))
    print("KERNEL_OK")
</pallas_src>

<mosaic_0001>
module attributes {stable_mosaic.version = 11 : i64} {
  func.func @_project_kernel(%arg0: i32, %arg1: memref<16x16xf32, #tpu.memory_space<vmem>>, %arg2: memref<16x36xf32, #tpu.memory_space<vmem>>, %arg3: memref<1x36xf32, #tpu.memory_space<vmem>>, %arg4: memref<16x36xf32, #tpu.memory_space<vmem>>) attributes {dimension_semantics = [#tpu.dimension_semantics<parallel>], iteration_bounds = array<i64: 4>, scalar_prefetch = 0 : i64, scratch_operands = 0 : i64, tpu.core_type = #tpu.core_type<tc>, window_params = [{transform_indices = @transform_0, window_bounds = array<i64: 16, 16>}, {pipeline_mode = #tpu.pipeline_mode<synchronous>, transform_indices = @transform_1, window_bounds = array<i64: 16, 36>}, {pipeline_mode = #tpu.pipeline_mode<synchronous>, transform_indices = @transform_2, window_bounds = array<i64: 1, 36>}, {transform_indices = @transform_3, window_bounds = array<i64: 16, 36>}]} {
    %c0 = arith.constant 0 : index
    %c0_0 = arith.constant 0 : index
    %0 = vector.load %arg1[%c0, %c0_0] : memref<16x16xf32, #tpu.memory_space<vmem>>, vector<16x16xf32>
    %c0_1 = arith.constant 0 : index
    %c0_2 = arith.constant 0 : index
    %1 = vector.load %arg2[%c0_1, %c0_2] : memref<16x36xf32, #tpu.memory_space<vmem>>, vector<16x36xf32>
    %cst = arith.constant dense<0.000000e+00> : vector<16x36xf32>
    %2 = tpu.matmul %0, %1, %cst {dimension_numbers = #tpu.dot_dimension_numbers<[1], [0], [0], [1], [0, 0, 1, 1], [], []>} : vector<16x16xf32>, vector<16x36xf32>, vector<16x36xf32> -> vector<16x36xf32>
    %c0_3 = arith.constant 0 : index
    %c0_4 = arith.constant 0 : index
    %3 = vector.load %arg3[%c0_3, %c0_4] : memref<1x36xf32, #tpu.memory_space<vmem>>, vector<1x36xf32>
    %4 = vector.broadcast %3 : vector<1x36xf32> to vector<16x36xf32>
    %5 = arith.addf %2, %4 : vector<16x36xf32>
    %c0_5 = arith.constant 0 : index
    %c0_6 = arith.constant 0 : index
    %6 = vector.load %arg4[%c0_5, %c0_6] : memref<16x36xf32, #tpu.memory_space<vmem>>, vector<16x36xf32>
    tpu.vector_store %arg4[%c0_5, %c0_6], %5 {strides = array<i32>} : memref<16x36xf32, #tpu.memory_space<vmem>>, vector<16x36xf32>,
    return
  }
  func.func @transform_0(%arg0: i32) -> (i32, i32) {
    %c0_i32 = arith.constant 0 : i32
    %c0_i32_0 = arith.constant 0 : i32
    return %arg0, %c0_i32 : i32, i32
  }
  func.func @transform_1(%arg0: i32) -> (i32, i32) {
    %c0_i32 = arith.constant 0 : i32
    %c0_i32_0 = arith.constant 0 : i32
    %c0_i32_1 = arith.constant 0 : i32
    return %c0_i32, %c0_i32_0 : i32, i32
  }
  func.func @transform_2(%arg0: i32) -> (i32, i32) {
    %c0_i32 = arith.constant 0 : i32
    %c0_i32_0 = arith.constant 0 : i32
    %c0_i32_1 = arith.constant 0 : i32
    return %c0_i32, %c0_i32_0 : i32, i32
  }
  func.func @transform_3(%arg0: i32) -> (i32, i32) {
    %c0_i32 = arith.constant 0 : i32
    %c0_i32_0 = arith.constant 0 : i32
    return %arg0, %c0_i32 : i32, i32
  }
}

module attributes {stable_mosaic.version = 11 : i64} {
  func.func @_layer1_kernel(%arg0: i32, %arg1: memref<16x64xbf16, #tpu.memory_space<vmem>>, %arg2: memref<16x36xf32, #tpu.memory_space<vmem>>, %arg3: memref<64x36xf32, #tpu.memory_space<vmem>>, %arg4: memref<36x4xf32, #tpu.memory_space<vmem>>, %arg5: memref<4x36xf32, #tpu.memory_space<vmem>>, %arg6: memref<36x8xf32, #tpu.memory_space<vmem>>, %arg7: memref<16x9xf32, #tpu.memory_space<vmem>>) attributes {dimension_semantics = [#tpu.dimension_semantics<parallel>], iteration_bounds = array<i64: 4>, scalar_prefetch = 0 : i64, scratch_operands = 0 : i64, tpu.core_type = #tpu.core_type<tc>, window_params = [{transform_indices = @transform_0, window_bounds = array<i64: 16, 64>}, {transform_indices = @transform_1, window_bounds = array<i64: 16, 36>}, {pipeline_mode = #tpu.pipeline_mode<synchronous>, transform_indices = @transform_2, window_bounds = array<i64: 64, 36>}, {pipeline_mode = #tpu.pipeline_mode<synchronous>, transform_indices = @transform_3, window_bounds = array<i64: 36, 4>}, {pipeline_mode = #tpu.pipeline_mode<synchronous>, transform_indices = @transform_4, window_bounds = array<i64: 4, 36>}, {pipeline_mode = #tpu.pipeline_mode<synchronous>, transform_indices = @transform_5, window_bounds = array<i64: 36, 8>}, {transform_indices = @transform_6, window_bounds = array<i64: 16, 9>}]} {
    %c0 = arith.constant 0 : index
    %c0_0 = arith.constant 0 : index
    %0 = vector.load %arg1[%c0, %c0_0] : memref<16x64xbf16, #tpu.memory_space<vmem>>, vector<16x64xbf16>
    %1 = arith.extf %0 : vector<16x64xbf16> to vector<16x64xf32>
    %cst = arith.constant 1.000000e+00 : f32
    %2 = vector.broadcast %cst : f32 to vector<16x64xf32>
    %3 = arith.subf %1, %2 : vector<16x64xf32>
    %cst_1 = arith.constant 1.000000e+30 : f32
    %4 = vector.broadcast %cst_1 : f32 to vector<16x64xf32>
    %5 = arith.mulf %3, %4 : vector<16x64xf32>
    %c0_2 = arith.constant 0 : index
    %c0_3 = arith.constant 0 : index
    %6 = vector.load %arg3[%c0_2, %c0_3] : memref<64x36xf32, #tpu.memory_space<vmem>>, vector<64x36xf32>
    %c0_4 = arith.constant 0 : index
    %c0_5 = arith.constant 0 : index
    %7 = vector.load %arg2[%c0_4, %c0_5] : memref<16x36xf32, #tpu.memory_space<vmem>>, vector<16x36xf32>
    %8 = arith.truncf %6 : vector<64x36xf32> to vector<64x36xbf16>
    %c0_6 = arith.constant 0 : index
    %c0_7 = arith.constant 0 : index
    %9 = vector.load %arg6[%c0_6, %c0_7] : memref<36x8xf32, #tpu.memory_space<vmem>>, vector<36x8xf32>
    %c0_8 = arith.constant 0 : index
    %c0_9 = arith.constant 0 : index
    %10 = vector.load %arg4[%c0_8, %c0_9] : memref<36x4xf32, #tpu.memory_space<vmem>>, vector<36x4xf32>
    %cst_10 = arith.constant dense<0.000000e+00> : vector<16x4xf32>
    %11 = tpu.matmul %7, %10, %cst_10 {dimension_numbers = #tpu.dot_dimension_numbers<[1], [0], [0], [1], [0, 0, 1, 1], [], []>} : vector<16x36xf32>, vector<36x4xf32>, vector<16x4xf32> -> vector<16x4xf32>
    %c0_11 = arith.constant 0 : index
    %c0_12 = arith.constant 0 : index
    %12 = vector.load %arg5[%c0_11, %c0_12] : memref<4x36xf32, #tpu.memory_space<vmem>>, vector<4x36xf32>
    %cst_13 = arith.constant dense<0.000000e+00> : vector<4x64xf32>
    %13 = tpu.matmul %12, %6, %cst_13 {dimension_numbers = #tpu.dot_dimension_numbers<[1], [1], [0], [0], [0, 0, 1, 0], [], []>} : vector<4x36xf32>, vector<64x36xf32>, vector<4x64xf32> -> vector<4x64xf32>
    %cst_14 = arith.constant 0.000000e+00 : f32
    %14 = vector.broadcast %cst_14 : f32 to vector<16x8xf32>
    %15 = vector.extract_strided_slice %11 {offsets = [0, 0], sizes = [16, 1], strides = [1, 1]} : vector<16x4xf32> to vector<16x1xf32>
    %16 = vector.extract_strided_slice %13 {offsets = [0, 0], sizes = [1, 64], strides = [1, 1]} : vector<4x64xf32> to vector<1x64xf32>
    %17 = vector.broadcast %15 : vector<16x1xf32> to vector<16x64xf32>
    %18 = vector.broadcast %16 : vector<1x64xf32> to vector<16x64xf32>
    %19 = arith.addf %17, %18 : vector<16x64xf32>
    %cst_15 = arith.constant 2.000000e-01 : f32
    %20 = vector.broadcast %cst_15 : f32 to vector<16x64xf32>
    %21 = arith.mulf %20, %19 : vector<16x64xf32>
    %22 = arith.maximumf %19, %21 : vector<16x64xf32>
    %23 = vector.extract_strided_slice %8 {offsets = [0, 0], sizes = [64, 9], strides = [1, 1]} : vector<64x36xbf16> to vector<64x9xbf16>
    %24 = arith.subf %5, %22 : vector<16x64xf32>
    %cst_16 = arith.constant dense<0xFF800000> : vector<16xf32>
    %25 = vector.multi_reduction <maximumf>, %24, %cst_16 [1] : vector<16x64xf32> to vector<16xf32>
    %26 = vector.shape_cast %25 : vector<16xf32> to vector<16x1xf32>
    %27 = vector.broadcast %26 : vector<16x1xf32> to vector<16x64xf32>
    %28 = arith.subf %24, %27 : vector<16x64xf32>
    %29 = math.exp %28 : vector<16x64xf32>
    %30 = arith.truncf %29 : vector<16x64xf32> to vector<16x64xbf16>
    %cst_17 = arith.constant dense<0.000000e+00> : vector<16x9xf32>
    %31 = tpu.matmul %30, %23, %cst_17 {dimension_numbers = #tpu.dot_dimension_numbers<[1], [0], [0], [1], [0, 0, 1, 1], [], []>} : vector<16x64xbf16>, vector<64x9xbf16>, vector<16x9xf32> -> vector<16x9xf32>
    %32 = vector.extract_strided_slice %31 {offsets = [0, 8], sizes = [16, 1], strides = [1, 1]} : vector<16x9xf32> to vector<16x1xf32>
    %cst_18 = arith.constant 9.99999968E-21 : f32
    %33 = vector.broadcast %cst_18 : f32 to vector<16x1xf32>
    %34 = arith.maximumf %32, %33 : vector<16x1xf32>
    %35 = tpu.reciprocal %34 {approx = true} : vector<16x1xf32> -> vector<16x1xf32>
    %36 = vector.broadcast %35 : vector<16x1xf32> to vector<16x9xf32>
    %37 = arith.mulf %31, %36 : vector<16x9xf32>
    %cst_19 = arith.constant 0.000000e+00 : f32
    %38 = vector.broadcast %cst_19 : f32 to vector<16x9xf32>
    %39 = arith.cmpf ogt, %37, %38 : vector<16x9xf32>
    %cst_20 = arith.constant 0.000000e+00 : f32
    %40 = vector.broadcast %cst_20 : f32 to vector<16x9xf32>
    %41 = arith.minimumf %37, %40 : vector<16x9xf32>
    %42 = math.exp %41 : vector<16x9xf32>
    %cst_21 = arith.constant 1.000000e+00 : f32
    %43 = vector.broadcast %cst_21 : f32 to vector<16x9xf32>
    %44 = arith.subf %42, %43 : vector<16x9xf32>
    %45 = arith.select %39, %37, %44 : vector<16x9xi1>, vector<16x9xf32>
    %46 = vector.extract_strided_slice %9 {offsets = [0, 0], sizes = [9, 8], strides = [1, 1]} : vector<36x8xf32> to vector<9x8xf32>
    %cst_22 = arith.constant dense<0.000000e+00> : vector<16x8xf32>
    %47 = tpu.matmul %45, %46, %cst_22 {dimension_numbers = #tpu.dot_dimension_numbers<[1], [0], [0], [1], [0, 0, 1, 1], [], []>} : vector<16x9xf32>, vector<9x8xf32>, vector<16x8xf32> -> vector<16x8xf32>
    %48 = arith.addf %14, %47 : vector<16x8xf32>
    %49 = vector.extract_strided_slice %11 {offsets = [0, 1], sizes = [16, 1], strides = [1, 1]} : vector<16x4xf32> to vector<16x1xf32>
    %50 = vector.extract_strided_slice %13 {offsets = [1, 0], sizes = [1, 64], strides = [1, 1]} : vector<4x64xf32> to vector<1x64xf32>
    %51 = vector.broadcast %49 : vector<16x1xf32> to vector<16x64xf32>
    %52 = vector.broadcast %50 : vector<1x64xf32> to vector<16x64xf32>
    %53 = arith.addf %51, %52 : vector<16x64xf32>
    %cst_23 = arith.constant 2.000000e-01 : f32
    %54 = vector.broadcast %cst_23 : f32 to vector<16x64xf32>
    %55 = arith.mulf %54, %53 : vector<16x64xf32>
    %56 = arith.maximumf %53, %55 : vector<16x64xf32>
    %57 = vector.extract_strided_slice %8 {offsets = [0, 9], sizes = [64, 9], strides = [1, 1]} : vector<64x36xbf16> to vector<64x9xbf16>
    %58 = arith.subf %5, %56 : vector<16x64xf32>
    %cst_24 = arith.constant dense<0xFF800000> : vector<16xf32>
    %59 = vector.multi_reduction <maximumf>, %58, %cst_24 [1] : vector<16x64xf32> to vector<16xf32>
    %60 = vector.shape_cast %59 : vector<16xf32> to vector<16x1xf32>
    %61 = vector.broadcast %60 : vector<16x1xf32> to vector<16x64xf32>
    %62 = arith.subf %58, %61 : vector<16x64xf32>
    %63 = math.exp %62 : vector<16x64xf32>
    %64 = arith.truncf %63 : vector<16x64xf32> to vector<16x64xbf16>
    %cst_25 = arith.constant dense<0.000000e+00> : vector<16x9xf32>
    %65 = tpu.matmul %64, %57, %cst_25 {dimension_numbers = #tpu.dot_dimension_numbers<[1], [0], [0], [1], [0, 0, 1, 1], [], []>} : vector<16x64xbf16>, vector<64x9xbf16>, vector<16x9xf32> -> vector<16x9xf32>
    %66 = vector.extract_strided_slice %65 {offsets = [0, 8], sizes = [16, 1], strides = [1, 1]} : vector<16x9xf32> to vector<16x1xf32>
    %cst_26 = arith.constant 9.99999968E-21 : f32
    %67 = vector.broadcast %cst_26 : f32 to vector<16x1xf32>
    %68 = arith.maximumf %66, %67 : vector<16x1xf32>
    %69 = tpu.reciprocal %68 {approx = true} : vector<16x1xf32> -> vector<16x1xf32>
    %70 = vector.broadcast %69 : vector<16x1xf32> to vector<16x9xf32>
    %71 = arith.mulf %65, %70 : vector<16x9xf32>
    %cst_27 = arith.constant 0.000000e+00 : f32
    %72 = vector.broadcast %cst_27 : f32 to vector<16x9xf32>
    %73 = arith.cmpf ogt, %71, %72 : vector<16x9xf32>
    %cst_28 = arith.constant 0.000000e+00 : f32
    %74 = vector.broadcast %cst_28 : f32 to vector<16x9xf32>
    %75 = arith.minimumf %71, %74 : vector<16x9xf32>
    %76 = math.exp %75 : vector<16x9xf32>
    %cst_29 = arith.constant 1.000000e+00 : f32
    %77 = vector.broadcast %cst_29 : f32 to vector<16x9xf32>
    %78 = arith.subf %76, %77 : vector<16x9xf32>
    %79 = arith.select %73, %71, %78 : vector<16x9xi1>, vector<16x9xf32>
    %80 = vector.extract_strided_slice %9 {offsets = [9, 0], sizes = [9, 8], strides = [1, 1]} : vector<36x8xf32> to vector<9x8xf32>
    %cst_30 = arith.constant dense<0.000000e+00> : vector<16x8xf32>
    %81 = tpu.matmul %79, %80, %cst_30 {dimension_numbers = #tpu.dot_dimension_numbers<[1], [0], [0], [1], [0, 0, 1, 1], [], []>} : vector<16x9xf32>, vector<9x8xf32>, vector<16x8xf32> -> vector<16x8xf32>
    %82 = arith.addf %48, %81 : vector<16x8xf32>
    %83 = vector.extract_strided_slice %11 {offsets = [0, 2], sizes = [16, 1], strides = [1, 1]} : vector<16x4xf32> to vector<16x1xf32>
    %84 = vector.extract_strided_slice %13 {offsets = [2, 0], sizes = [1, 64], strides = [1, 1]} : vector<4x64xf32> to vector<1x64xf32>
    %85 = vector.broadcast %83 : vector<16x1xf32> to vector<16x64xf32>
    %86 = vector.broadcast %84 : vector<1x64xf32> to vector<16x64xf32>
    %87 = arith.addf %85, %86 : vector<16x64xf32>
    %cst_31 = arith.constant 2.000000e-01 : f32
    %88 = vector.broadcast %cst_31 : f32 to vector<16x64xf32>
    %89 = arith.mulf %88, %87 : vector<16x64xf32>
    %90 = arith.maximumf %87, %89 : vector<16x64xf32>
    %91 = vector.extract_strided_slice %8 {offsets = [0, 18], sizes = [64, 9], strides = [1, 1]} : vector<64x36xbf16> to vector<64x9xbf16>
    %92 = arith.subf %5, %90 : vector<16x64xf32>
    %cst_32 = arith.constant dense<0xFF800000> : vector<16xf32>
    %93 = vector.multi_reduction <maximumf>, %92, %cst_32 [1] : vector<16x64xf32> to vector<16xf32>
    %94 = vector.shape_cast %93 : vector<16xf32> to vector<16x1xf32>
    %95 = vector.broadcast %94 : vector<16x1xf32> to vector<16x64xf32>
    %96 = arith.subf %92, %95 : vector<16x64xf32>
    %97 = math.exp %96 : vector<16x64xf32>
    %98 = arith.truncf %97 : vector<16x64xf32> to vector<16x64xbf16>
    %cst_33 = arith.constant dense<0.000000e+00> : vector<16x9xf32>
    %99 = tpu.matmul %98, %91, %cst_33 {dimension_numbers = #tpu.dot_dimension_numbers<[1], [0], [0], [1], [0, 0, 1, 1], [], []>} : vector<16x64xbf16>, vector<64x9xbf16>, vector<16x9xf32> -> vector<16x9xf32>
    %100 = vector.extract_strided_slice %99 {offsets = [0, 8], sizes = [16, 1], strides = [1, 1]} : vector<16x9xf32> to vector<16x1xf32>
    %cst_34 = arith.constant 9.99999968E-21 : f32
    %101 = vector.broadcast %cst_34 : f32 to vector<16x1xf32>
    %102 = arith.maximumf %100, %101 : vector<16x1xf32>
    %103 = tpu.reciprocal %102 {approx = true} : vector<16x1xf32> -> vector<16x1xf32>
    %104 = vector.broadcast %103 : vector<16x1xf32> to vector<16x9xf32>
    %105 = arith.mulf %99, %104 : vector<16x9xf32>
    %cst_35 = arith.constant 0.000000e+00 : f32
    %106 = vector.broadcast %cst_35 : f32 to vector<16x9xf32>
    %107 = arith.cmpf ogt, %105, %106 : vector<16x9xf32>
    %cst_36 = arith.constant 0.000000e+00 : f32
    %108 = vector.broadcast %cst_36 : f32 to vector<16x9xf32>
    %109 = arith.minimumf %105, %108 : vector<16x9xf32>
    %110 = math.exp %109 : vector<16x9xf32>
    %cst_37 = arith.constant 1.000000e+00 : f32
    %111 = vector.broadcast %cst_37 : f32 to vector<16x9xf32>
    %112 = arith.subf %110, %111 : vector<16x9xf32>
    %113 = arith.select %107, %105, %112 : vector<16x9xi1>, vector<16x9xf32>
    %114 = vector.extract_strided_slice %9 {offsets = [18, 0], sizes = [9, 8], strides = [1, 1]} : vector<36x8xf32> to vector<9x8xf32>
    %cst_38 = arith.constant dense<0.000000e+00> : vector<16x8xf32>
    %115 = tpu.matmul %113, %114, %cst_38 {dimension_numbers = #tpu.dot_dimension_numbers<[1], [0], [0], [1], [0, 0, 1, 1], [], []>} : vector<16x9xf32>, vector<9x8xf32>, vector<16x8xf32> -> vector<16x8xf32>
    %116 = arith.addf %82, %115 : vector<16x8xf32>
    %117 = vector.extract_strided_slice %11 {offsets = [0, 3], sizes = [16, 1], strides = [1, 1]} : vector<16x4xf32> to vector<16x1xf32>
    %118 = vector.extract_strided_slice %13 {offsets = [3, 0], sizes = [1, 64], strides = [1, 1]} : vector<4x64xf32> to vector<1x64xf32>
    %119 = vector.broadcast %117 : vector<16x1xf32> to vector<16x64xf32>
    %120 = vector.broadcast %118 : vector<1x64xf32> to vector<16x64xf32>
    %121 = arith.addf %119, %120 : vector<16x64xf32>
    %cst_39 = arith.constant 2.000000e-01 : f32
    %122 = vector.broadcast %cst_39 : f32 to vector<16x64xf32>
    %123 = arith.mulf %122, %121 : vector<16x64xf32>
    %124 = arith.maximumf %121, %123 : vector<16x64xf32>
    %125 = vector.extract_strided_slice %8 {offsets = [0, 27], sizes = [64, 9], strides = [1, 1]} : vector<64x36xbf16> to vector<64x9xbf16>
    %126 = arith.subf %5, %124 : vector<16x64xf32>
    %cst_40 = arith.constant dense<0xFF800000> : vector<16xf32>
    %127 = vector.multi_reduction <maximumf>, %126, %cst_40 [1] : vector<16x64xf32> to vector<16xf32>
    %128 = vector.shape_cast %127 : vector<16xf32> to vector<16x1xf32>
    %129 = vector.broadcast %128 : vector<16x1xf32> to vector<16x64xf32>
    %130 = arith.subf %126, %129 : vector<16x64xf32>
    %131 = math.exp %130 : vector<16x64xf32>
    %132 = arith.truncf %131 : vector<16x64xf32> to vector<16x64xbf16>
    %cst_41 = arith.constant dense<0.000000e+00> : vector<16x9xf32>
    %133 = tpu.matmul %132, %125, %cst_41 {dimension_numbers = #tpu.dot_dimension_numbers<[1], [0], [0], [1], [0, 0, 1, 1], [], []>} : vector<16x64xbf16>, vector<64x9xbf16>, vector<16x9xf32> -> vector<16x9xf32>
    %134 = vector.extract_strided_slice %133 {offsets = [0, 8], sizes = [16, 1], strides = [1, 1]} : vector<16x9xf32> to vector<16x1xf32>
    %cst_42 = arith.constant 9.99999968E-21 : f32
    %135 = vector.broadcast %cst_42 : f32 to vector<16x1xf32>
    %136 = arith.maximumf %134, %135 : vector<16x1xf32>
    %137 = tpu.reciprocal %136 {approx = true} : vector<16x1xf32> -> vector<16x1xf32>
    %138 = vector.broadcast %137 : vector<16x1xf32> to vector<16x9xf32>
    %139 = arith.mulf %133, %138 : vector<16x9xf32>
    %cst_43 = arith.constant 0.000000e+00 : f32
    %140 = vector.broadcast %cst_43 : f32 to vector<16x9xf32>
    %141 = arith.cmpf ogt, %139, %140 : vector<16x9xf32>
    %cst_44 = arith.constant 0.000000e+00 : f32
    %142 = vector.broadcast %cst_44 : f32 to vector<16x9xf32>
    %143 = arith.minimumf %139, %142 : vector<16x9xf32>
    %144 = math.exp %143 : vector<16x9xf32>
    %cst_45 = arith.constant 1.000000e+00 : f32
    %145 = vector.broadcast %cst_45 : f32 to vector<16x9xf32>
    %146 = arith.subf %144, %145 : vector<16x9xf32>
    %147 = arith.select %141, %139, %146 : vector<16x9xi1>, vector<16x9xf32>
    %148 = vector.extract_strided_slice %9 {offsets = [27, 0], sizes = [9, 8], strides = [1, 1]} : vector<36x8xf32> to vector<9x8xf32>
    %cst_46 = arith.constant dense<0.000000e+00> : vector<16x8xf32>
    %149 = tpu.matmul %147, %148, %cst_46 {dimension_numbers = #tpu.dot_dimension_numbers<[1], [0], [0], [1], [0, 0, 1, 1], [], []>} : vector<16x9xf32>, vector<9x8xf32>, vector<16x8xf32> -> vector<16x8xf32>
    %150 = arith.addf %116, %149 : vector<16x8xf32>
    %cst_47 = arith.constant 1.000000e+00 : f32
    %151 = vector.broadcast %cst_47 : f32 to vector<16x1xf32>
    %152 = tpu.concatenate %150, %151 in 1 : vector<16x8xf32>, vector<16x1xf32> -> vector<16x9xf32>
    %c0_48 = arith.constant 0 : index
    %c0_49 = arith.constant 0 : index
    %153 = vector.load %arg7[%c0_48, %c0_49] : memref<16x9xf32, #tpu.memory_space<vmem>>, vector<16x9xf32>
    tpu.vector_store %arg7[%c0_48, %c0_49], %152 {strides = array<i32>} : memref<16x9xf32, #tpu.memory_space<vmem>>, vector<16x9xf32>,
    return
  }
  func.func @transform_0(%arg0: i32) -> (i32, i32) {
    %c0_i32 = arith.constant 0 : i32
    %c0_i32_0 = arith.constant 0 : i32
    return %arg0, %c0_i32 : i32, i32
  }
  func.func @transform_1(%arg0: i32) -> (i32, i32) {
    %c0_i32 = arith.constant 0 : i32
    %c0_i32_0 = arith.constant 0 : i32
    return %arg0, %c0_i32 : i32, i32
  }
  func.func @transform_2(%arg0: i32) -> (i32, i32) {
    %c0_i32 = arith.constant 0 : i32
    %c0_i32_0 = arith.constant 0 : i32
    %c0_i32_1 = arith.constant 0 : i32
    return %c0_i32, %c0_i32_0 : i32, i32
  }
  func.func @transform_3(%arg0: i32) -> (i32, i32) {
    %c0_i32 = arith.constant 0 : i32
    %c0_i32_0 = arith.constant 0 : i32
    %c0_i32_1 = arith.constant 0 : i32
    return %c0_i32, %c0_i32_0 : i32, i32
  }
  func.func @transform_4(%arg0: i32) -> (i32, i32) {
    %c0_i32 = arith.constant 0 : i32
    %c0_i32_0 = arith.constant 0 : i32
    %c0_i32_1 = arith.constant 0 : i32
    return %c0_i32, %c0_i32_0 : i32, i32
  }
  func.func @transform_5(%arg0: i32) -> (i32, i32) {
    %c0_i32 = arith.constant 0 : i32
    %c0_i32_0 = arith.constant 0 : i32
    %c0_i32_1 = arith.constant 0 : i32
    return %c0_i32, %c0_i32_0 : i32, i32
  }
  func.func @transform_6(%arg0: i32) -> (i32, i32) {
    %c0_i32 = arith.constant 0 : i32
    %c0_i32_0 = arith.constant 0 : i32
    return %arg0, %c0_i32 : i32, i32
  }
}

module attributes {stable_mosaic.version = 11 : i64} {
  func.func @_layer2_kernel(%arg0: i32, %arg1: memref<16x64xbf16, #tpu.memory_space<vmem>>, %arg2: memref<16x9xf32, #tpu.memory_space<vmem>>, %arg3: memref<64x9xf32, #tpu.memory_space<vmem>>, %arg4: memref<9x1xf32, #tpu.memory_space<vmem>>, %arg5: memref<1x9xf32, #tpu.memory_space<vmem>>, %arg6: memref<16x8xf32, #tpu.memory_space<vmem>>) attributes {dimension_semantics = [#tpu.dimension_semantics<parallel>], iteration_bounds = array<i64: 4>, scalar_prefetch = 0 : i64, scratch_operands = 0 : i64, tpu.core_type = #tpu.core_type<tc>, window_params = [{transform_indices = @transform_0, window_bounds = array<i64: 16, 64>}, {transform_indices = @transform_1, window_bounds = array<i64: 16, 9>}, {pipeline_mode = #tpu.pipeline_mode<synchronous>, transform_indices = @transform_2, window_bounds = array<i64: 64, 9>}, {pipeline_mode = #tpu.pipeline_mode<synchronous>, transform_indices = @transform_3, window_bounds = array<i64: 9, 1>}, {pipeline_mode = #tpu.pipeline_mode<synchronous>, transform_indices = @transform_4, window_bounds = array<i64: 1, 9>}, {transform_indices = @transform_5, window_bounds = array<i64: 16, 8>}]} {
    %c0 = arith.constant 0 : index
    %c0_0 = arith.constant 0 : index
    %0 = vector.load %arg1[%c0, %c0_0] : memref<16x64xbf16, #tpu.memory_space<vmem>>, vector<16x64xbf16>
    %1 = arith.extf %0 : vector<16x64xbf16> to vector<16x64xf32>
    %cst = arith.constant 1.000000e+00 : f32
    %2 = vector.broadcast %cst : f32 to vector<16x64xf32>
    %3 = arith.subf %1, %2 : vector<16x64xf32>
    %cst_1 = arith.constant 1.000000e+30 : f32
    %4 = vector.broadcast %cst_1 : f32 to vector<16x64xf32>
    %5 = arith.mulf %3, %4 : vector<16x64xf32>
    %c0_2 = arith.constant 0 : index
    %c0_3 = arith.constant 0 : index
    %6 = vector.load %arg3[%c0_2, %c0_3] : memref<64x9xf32, #tpu.memory_space<vmem>>, vector<64x9xf32>
    %c0_4 = arith.constant 0 : index
    %c0_5 = arith.constant 0 : index
    %7 = vector.load %arg2[%c0_4, %c0_5] : memref<16x9xf32, #tpu.memory_space<vmem>>, vector<16x9xf32>
    %c0_6 = arith.constant 0 : index
    %c0_7 = arith.constant 0 : index
    %8 = vector.load %arg4[%c0_6, %c0_7] : memref<9x1xf32, #tpu.memory_space<vmem>>, vector<9x1xf32>
    %cst_8 = arith.constant dense<0.000000e+00> : vector<16x1xf32>
    %9 = tpu.matmul %7, %8, %cst_8 {dimension_numbers = #tpu.dot_dimension_numbers<[1], [0], [0], [1], [0, 0, 1, 1], [], []>} : vector<16x9xf32>, vector<9x1xf32>, vector<16x1xf32> -> vector<16x1xf32>
    %c0_9 = arith.constant 0 : index
    %c0_10 = arith.constant 0 : index
    %10 = vector.load %arg5[%c0_9, %c0_10] : memref<1x9xf32, #tpu.memory_space<vmem>>, vector<1x9xf32>
    %cst_11 = arith.constant dense<0.000000e+00> : vector<1x64xf32>
    %11 = tpu.matmul %10, %6, %cst_11 {dimension_numbers = #tpu.dot_dimension_numbers<[1], [1], [0], [0], [0, 0, 1, 0], [], []>} : vector<1x9xf32>, vector<64x9xf32>, vector<1x64xf32> -> vector<1x64xf32>
    %12 = vector.broadcast %9 : vector<16x1xf32> to vector<16x64xf32>
    %13 = vector.broadcast %11 : vector<1x64xf32> to vector<16x64xf32>
    %14 = arith.addf %12, %13 : vector<16x64xf32>
    %cst_12 = arith.constant 2.000000e-01 : f32
    %15 = vector.broadcast %cst_12 : f32 to vector<16x64xf32>
    %16 = arith.mulf %15, %14 : vector<16x64xf32>
    %17 = arith.maximumf %14, %16 : vector<16x64xf32>
    %18 = arith.truncf %6 : vector<64x9xf32> to vector<64x9xbf16>
    %19 = arith.subf %5, %17 : vector<16x64xf32>
    %cst_13 = arith.constant dense<0xFF800000> : vector<16xf32>
    %20 = vector.multi_reduction <maximumf>, %19, %cst_13 [1] : vector<16x64xf32> to vector<16xf32>
    %21 = vector.shape_cast %20 : vector<16xf32> to vector<16x1xf32>
    %22 = vector.broadcast %21 : vector<16x1xf32> to vector<16x64xf32>
    %23 = arith.subf %19, %22 : vector<16x64xf32>
    %24 = math.exp %23 : vector<16x64xf32>
    %25 = arith.truncf %24 : vector<16x64xf32> to vector<16x64xbf16>
    %cst_14 = arith.constant dense<0.000000e+00> : vector<16x9xf32>
    %26 = tpu.matmul %25, %18, %cst_14 {dimension_numbers = #tpu.dot_dimension_numbers<[1], [0], [0], [1], [0, 0, 1, 1], [], []>} : vector<16x64xbf16>, vector<64x9xbf16>, vector<16x9xf32> -> vector<16x9xf32>
    %27 = vector.extract_strided_slice %26 {offsets = [0, 8], sizes = [16, 1], strides = [1, 1]} : vector<16x9xf32> to vector<16x1xf32>
    %28 = vector.extract_strided_slice %26 {offsets = [0, 0], sizes = [16, 8], strides = [1, 1]} : vector<16x9xf32> to vector<16x8xf32>
    %cst_15 = arith.constant 9.99999968E-21 : f32
    %29 = vector.broadcast %cst_15 : f32 to vector<16x1xf32>
    %30 = arith.maximumf %27, %29 : vector<16x1xf32>
    %31 = tpu.reciprocal %30 {approx = true} : vector<16x1xf32> -> vector<16x1xf32>
    %32 = vector.broadcast %31 : vector<16x1xf32> to vector<16x8xf32>
    %33 = arith.mulf %28, %32 : vector<16x8xf32>
    %cst_16 = arith.constant 0.000000e+00 : f32
    %34 = vector.broadcast %cst_16 : f32 to vector<16x8xf32>
    %35 = arith.cmpf ogt, %33, %34 : vector<16x8xf32>
    %cst_17 = arith.constant 0.000000e+00 : f32
    %36 = vector.broadcast %cst_17 : f32 to vector<16x8xf32>
    %37 = arith.minimumf %33, %36 : vector<16x8xf32>
    %38 = math.exp %37 : vector<16x8xf32>
    %cst_18 = arith.constant 1.000000e+00 : f32
    %39 = vector.broadcast %cst_18 : f32 to vector<16x8xf32>
    %40 = arith.subf %38, %39 : vector<16x8xf32>
    %41 = arith.select %35, %33, %40 : vector<16x8xi1>, vector<16x8xf32>
    %cst_19 = arith.constant dense<0xFF800000> : vector<16xf32>
    %42 = vector.multi_reduction <maximumf>, %41, %cst_19 [1] : vector<16x8xf32> to vector<16xf32>
    %43 = vector.shape_cast %42 : vector<16xf32> to vector<16x1xf32>
    %44 = vector.broadcast %43 : vector<16x1xf32> to vector<16x8xf32>
    %45 = arith.subf %41, %44 : vector<16x8xf32>
    %46 = math.exp %45 : vector<16x8xf32>
    %cst_20 = arith.constant dense<0.000000e+00> : vector<16xf32>
    %47 = vector.multi_reduction <add>, %46, %cst_20 [1] : vector<16x8xf32> to vector<16xf32>
    %48 = vector.shape_cast %47 : vector<16xf32> to vector<16x1xf32>
    %49 = math.log %48 : vector<16x1xf32>
    %50 = arith.addf %43, %49 : vector<16x1xf32>
    %51 = vector.broadcast %50 : vector<16x1xf32> to vector<16x8xf32>
    %52 = arith.subf %41, %51 : vector<16x8xf32>
    %c0_21 = arith.constant 0 : index
    %c0_22 = arith.constant 0 : index
    %53 = vector.load %arg6[%c0_21, %c0_22] : memref<16x8xf32, #tpu.memory_space<vmem>>, vector<16x8xf32>
    tpu.vector_store %arg6[%c0_21, %c0_22], %52 {strides = array<i32>} : memref<16x8xf32, #tpu.memory_space<vmem>>, vector<16x8xf32>,
    return
  }
  func.func @transform_0(%arg0: i32) -> (i32, i32) {
    %c0_i32 = arith.constant 0 : i32
    %c0_i32_0 = arith.constant 0 : i32
    return %arg0, %c0_i32 : i32, i32
  }
  func.func @transform_1(%arg0: i32) -> (i32, i32) {
    %c0_i32 = arith.constant 0 : i32
    %c0_i32_0 = arith.constant 0 : i32
    return %arg0, %c0_i32 : i32, i32
  }
  func.func @transform_2(%arg0: i32) -> (i32, i32) {
    %c0_i32 = arith.constant 0 : i32
    %c0_i32_0 = arith.constant 0 : i32
    %c0_i32_1 = arith.constant 0 : i32
    return %c0_i32, %c0_i32_0 : i32, i32
  }
  func.func @transform_3(%arg0: i32) -> (i32, i32) {
    %c0_i32 = arith.constant 0 : i32
    %c0_i32_0 = arith.constant 0 : i32
    %c0_i32_1 = arith.constant 0 : i32
    return %c0_i32, %c0_i32_0 : i32, i32
  }
  func.func @transform_4(%arg0: i32) -> (i32, i32) {
    %c0_i32 = arith.constant 0 : i32
    %c0_i32_0 = arith.constant 0 : i32
    %c0_i32_1 = arith.constant 0 : i32
    return %c0_i32, %c0_i32_0 : i32, i32
  }
  func.func @transform_5(%arg0: i32) -> (i32, i32) {
    %c0_i32 = arith.constant 0 : i32
    %c0_i32_0 = arith.constant 0 : i32
    return %arg0, %c0_i32 : i32, i32
  }
}

</mosaic_0001>

<bundles_post_ra>
// kernel: spgat_forward.3
= control target key start
LH: loop header
LB: loop body
LE: loop exit
PB: predicated region body
PF: predicated region fallthrough
CT: control target
= control target key end

     0   :  { %s391_s12 = smov 0   ;;  %s417_s0 = inlined_call_operand.vmem [shape: f32[64,16], index: 0, kind: input, shape index: {}]   ;;  %s418_s1 = inlined_call_operand.vmem [shape: f32[16,36], index: 1, kind: input, shape index: {}]   ;;  %s419_s2 = inlined_call_operand.vmem [shape: f32[1,36], index: 2, kind: input, shape index: {}]   ;;  %s420_s3 = inlined_call_operand.vmem [shape: f32[64,36], index: 3, kind: output, shape index: {}]  }
   0x1 LB: > { %s326_s13 = sadd.s32 4294967295, %s369_s12   ;;  %p330_p0 = scmp.ge.s32.totalorder %s369_s12, 1  ;;  %s369_s12 = sphi %s391_s12, %s13_s12  }
   0x2   : > { %p138_p1 = scmp.lt.s32.totalorder %s369_s12, 5 }
   0x4   : > { %p139_p2 = pnand %p330_p0, %p138_p1 }
   0x5   : > { %v176_v0 = vld [vmem:[%s418_s1] sm:$0xff] (!%p139_p2)  ;;  %v177_v1 = vld [vmem:[%s418_s1 + $0x8] sm:$0xff] (!%p139_p2)  ;;  %s331_s18 = sshll.u32 (!%p139_p2), %s326_s13, 1  ;;  %vm185_vm0 = vcmask (!%p139_p2), 130048   ;;  %vm267_vm1 = vcmask (!%p139_p2), 293888  }
   0x6   : > { %142 = sbr.rel (%p139_p2) target bundleno = 234 (0xea), region = 32  ;;  %v351_v2 = vpack.c.bf16 (!%p139_p2), %v177_v1, %v176_v0  ;;  %p163_p3 = scmp.lt.s32.totalorder (!%p139_p2), %s331_s18, 7  ;;  %v335_v5 = vld [vmem:[%s419_s2] ss:$0 sm:$0xff] (!%p139_p2) }
   0x8   : > { %352 = vmatprep.subr.bf16.mxu0 (!%p139_p2), %v351_v2 }
   0x9   : > { %354 = vmatpush3.bf16.msra.mxu0 (!%p139_p2), %v351_v2 }
   0xd   : > { %s422_s18 = smov (!%p163_p3, %s331_s18), 7 }
   0xe   : > { %s332_s19 = sshll.u32 %s422_s18, 3 }
   0xf   : > { %s166_s22 = scalar_lea.vmem %s417_s0, %s332_s19  ;;  %s172_s27 = scalar_lea.vmem %s420_s3, %s332_s19 }
  0x10   : > { %v174_v3 = vld [vmem:[%s166_s22] sm:$0xff]  ;;  %v175_v4 = vld [vmem:[%s166_s22 + $0x8] sm:$0xff] }
  0x11   : > { %348 = vmatprep.mubr.msk.f32.mxu0 %vm185_vm0, %v174_v3 }
  0x12   : > { %349 = vmatmul.mubr.msk.f32.vlgmr.msra.gmra.mrb[0].mxu0 %vm185_vm0, %v175_v4 }
  0xe5   : > { %v350_v6 = vpop.f32.mrb[0].mxu0 }
  0xe6   : > { %v258_v7 = vpop.f32.mrb[1].mxu0  ;;  %v264_v9 = vadd.f32 %v350_v6, %v335_v5 }
  0xe7   : > { %v259_v8 = vadd.f32 %v335_v5, %v258_v7 }
  0xe8   : > { %269 = vst.msk [vmem:[%s172_s27 + $0x8] sm:$0xff] %vm267_vm1, %v264_v9 }
  0xe9   : > { %268 = vst.msk [vmem:[%s172_s27] sm:$0xff] %vm267_vm1, %v259_v8 }
  0xea PF: > { %s13_s12 = sadd.s32 1, %s369_s12  }
  0xeb   : > { %p10_p4 = scmp.ge.s32.totalorder %s13_s12, 6  }
  0xed   :  { %12 = sbr.rel (!%p10_p4) target bundleno = 1 (0x1), region = 62 }

// kernel: spgat_forward.5
= control target key start
LH: loop header
LB: loop body
LE: loop exit
PB: predicated region body
PF: predicated region fallthrough
CT: control target
= control target key end

     0   :  { %s857_s18 = smov 0   ;;  %s946_s0 = inlined_call_operand.vmem [shape: bf16[64,64], index: 0, kind: input, shape index: {}]   ;;  %s947_s1 = inlined_call_operand.vmem [shape: f32[64,9], index: 1, kind: input, shape index: {}, may-alias: {1,2}]   ;;  %s948_s2 = inlined_call_operand.vmem [shape: f32[64,9], index: 2, kind: input, shape index: {}, may-alias: {1,2}]   ;;  %s949_s3 = inlined_call_operand.vmem [shape: f32[9,1], index: 3, kind: input, shape index: {}]   ;;  %s950_s4 = inlined_call_operand.vmem [shape: f32[1,9], index: 4, kind: input, shape index: {}]   ;;  %s951_s5 = inlined_call_operand.vmem [shape: f32[64,8], index: 5, kind: output, shape index: {}]  }
   0x1 LB: > { %s664_s19 = sadd.s32 4294967295, %s819_s18   ;;  %p668_p0 = scmp.ge.s32.totalorder %s819_s18, 1  ;;  %s819_s18 = sphi %s857_s18, %s15_s18  }
   0x2   : > { %p199_p1 = scmp.lt.s32.totalorder %s819_s18, 5 }
   0x4   : > { %p200_p2 = pnand %p668_p0, %p199_p1 }
   0x5   : > { %v269_v0 = vld [vmem:[%s949_s3] sm:$0xff] (!%p200_p2)  ;;  %v270_v1 = vld [vmem:[%s949_s3 + $0x8] sm:$0x1] (!%p200_p2)  ;;  %vm278_vm0 = vcmask (!%p200_p2), 1040384   ;;  %s669_s24 = sshll.u32 (!%p200_p2), %s664_s19, 1  ;;  %vm821_vm1 = vmmov (!%p200_p2), 1   ;;  %v465_v26 = vlaneseq (!%p200_p2) }
   0x6   : > { %203 = sbr.rel (%p200_p2) target bundleno = 1227 (0x4cb), region = 40  ;;  %v754_v2 = vpack.c.bf16 (!%p200_p2), %v270_v1, %v269_v0  ;;  %vm755_vm2 = vmpackc.low (!%p200_p2), %vm278_vm0, %vm821_vm1  ;;  %p233_p3 = scmp.lt.s32.totalorder (!%p200_p2), %s669_s24, 7  ;;  %vm271_vm3 = vcmask (!%p200_p2), 72704   ;;  %v259_v3 = vld [vmem:[%s948_s2] sm:$0xff] (!%p200_p2)  ;;  %v260_v4 = vld [vmem:[%s948_s2 + $0x8] sm:$0xff] (!%p200_p2)  ;;  %v822_v5 = vmov (!%p200_p2), 0.0|0.0  }
   0x7   : > { %760 = vmatprep.subr.bf16.mxu1 (!%p200_p2), %v822_v5  ;;  %v761_v6 = vpack.c.bf16 (!%p200_p2), %v260_v4, %v259_v3  ;;  %vm879_vm4 = vmpackc.low (!%p200_p2), %vm271_vm3, %vm271_vm3  ;;  %vm823_vm5 = vmmov (!%p200_p2), 0   ;;  %v824_v8 = vmov (!%p200_p2), 0.0   ;;  %v261_v9 = vld [vmem:[%s948_s2 + $0x10] sm:$0xff] (!%p200_p2)  ;;  %v262_v10 = vld [vmem:[%s948_s2 + $0x18] sm:$0xff] (!%p200_p2)  ;;  %v825_v21 = vmov (!%p200_p2), 0  }
   0x8   : > { %756 = vmatprep.subr.msk.bf16.mxu0 (!%p200_p2), %vm755_vm2, %v754_v2  ;;  %739 = vmatprep.mubr.msk.f32.mxu1 (!%p200_p2), %vm823_vm5, %v824_v8  ;;  %v765_v13 = vpack.c.bf16 (!%p200_p2), %v262_v10, %v261_v9  ;;  %v263_v14 = vld [vmem:[%s948_s2 + $0x20] sm:$0xff] (!%p200_p2)  ;;  %v264_v15 = vld [vmem:[%s948_s2 + $0x28] sm:$0xff] (!%p200_p2)  ;;  %v265_v17 = vld [vmem:[%s948_s2 + $0x30] sm:$0xff] (!%p200_p2)  ;;  %v466_v27 = vshrl.u32 (!%p200_p2), %v465_v26, 7  ;;  %vm481_vm6 = vcmask (!%p200_p2), 523264   ;;  %v826_v58 = vmov (!%p200_p2), 8  }
   0x9   : > { %759 = vmatpush3.bf16.msk.msra.mxu0 (!%p200_p2), %vm755_vm2, %v754_v2  ;;  %763 = vmatpush3.bf16.xpose.msk.msra.mxu1 (!%p200_p2), %vm879_vm4, %v761_v6  ;;  %v769_v16 = vpack.c.bf16 (!%p200_p2), %v264_v15, %v263_v14  ;;  %v266_v18 = vld [vmem:[%s948_s2 + $0x38] sm:$0xff] (!%p200_p2)  ;;  %v357_v20 = vld [vmem:[%s950_s4] sm:$0x1] (!%p200_p2)  ;;  %vm567_vm7 = vcmask (!%p200_p2), 64512  }
   0xa   : > { %764 = vmatprep.subr.bf16.mxu1 (!%p200_p2), %v822_v5  ;;  %742 = vmatprep.subr.bf16.mxu0 (!%p200_p2), %v824_v8  ;;  %v773_v19 = vpack.c.bf16 (!%p200_p2), %v266_v18, %v265_v17  ;;  %v467_v29 = vsub.s32 (!%p200_p2), 0, %v466_v27 }
   0xb   : > { %790 = vset.pattern.permute.xlu0 (!%p200_p2), %v825_v21  ;;  %792 = vset.pattern.permute.xlu1 (!%p200_p2), %v826_v58 }
   0xd   : > { %s955_s24 = smov (!%p233_p3, %s669_s24), 7 }
   0xe   : > { %s672_s29 = sshll.u32 %s955_s24, 3  ;;  %s670_s23 = sshll.u32 %s955_s24, 2 }
   0xf   : > { %s242_s11 = scalar_lea.vmem %s947_s1, %s672_s29  ;;  %s236_s27 = scalar_lea.vmem %s946_s0, %s670_s23 }
  0x10   : > { %v267_v11 = vld [vmem:[%s242_s11] sm:$0xff]  ;;  %v268_v12 = vld [vmem:[%s242_s11 + $0x8] sm:$0xff]  ;;  %s248_s6 = scalar_lea.vmem %s951_s5, %s672_s29 }
  0x11   : > { %720 = vmatprep.mubr.msk.f32.mxu0 %vm271_vm3, %v267_v11  ;;  %767 = vmatpush3.bf16.xpose.msk.msra.mxu1 %vm879_vm4, %v765_v13  ;;  %v695_v28 = vld [vmem:[%s236_s27] sm:$0xff]  }
  0x12   : > { %721 = vmatmul.mubr.msk.f32.vlgmr.msra.gmra.mrb[0].mxu0 %vm271_vm3, %v268_v12  ;;  %768 = vmatprep.subr.bf16.mxu1 %v822_v5  ;;  %v696_v30 = vunpack.c.l.bf16 %v695_v28  ;;  %v697_v33 = vunpack.c.h.bf16 %v695_v28 }
  0x13   : > { %743 = vmatpush3.bf16.msra.mxu0 %v761_v6  ;;  %750 = vmatprep.mubr.msk.bf16.mxu0 %vm823_vm5, %v824_v8 }
  0x14   : > { %744 = vmatprep.subr.bf16.mxu0 %v824_v8  ;;  %v675_v32 = vadd.f32 -1.0, %v696_v30  ;;  %v676_v38 = vadd.f32 -1.0, %v697_v33 }
  0x16   : > { %v257_v37 = vmul.f32 1e+30, %v675_v32  ;;  %v258_v44 = vmul.f32 1e+30, %v676_v38 }
  0x17   : > { %745 = vmatpush3.bf16.msra.mxu0 %v765_v13 }
  0x18   : > { %746 = vmatprep.subr.bf16.mxu0 %v824_v8 }
  0x19   : > { %771 = vmatpush3.bf16.xpose.msk.msra.mxu1 %vm879_vm4, %v769_v16 }
  0x1a   : > { %772 = vmatprep.subr.bf16.mxu1 %v822_v5 }
  0x1b   : > { %747 = vmatpush3.bf16.msra.mxu0 %v769_v16 }
  0x1c   : > { %748 = vmatprep.subr.bf16.mxu0 %v824_v8 }
  0x1f   : > { %749 = vmatpush3.bf16.msra.mxu0 %v773_v19 }
  0x21   : > { %775 = vmatpush3.bf16.xpose.msk.msra.mxu1 %vm879_vm4, %v773_v19 }
  0x28   : > { %740 = vmatmul.mubr.msk.f32.vlgmr.msra.gmra.mrb[0].mxu1 %vm271_vm3, %v357_v20 }
  0xe5   : > { %v722_v22 = vpop.f32.mrb[0].mxu0 }
  0xe6   : > { %v348_v23 = vpop.f32.mrb[1].mxu0 }
  0xe7   : > { %457 = vperm.xlu0 %790, %v348_v23  }
  0xeb   : > { %462 = vperm.xlu0 %790, %v722_v22  }
  0xef   : > { %791 = vset.pattern.permute.xlu0 %v826_v58 }
  0xfb   : > { %v451_v24 = vpop.f32.mrb[0].mxu1 }
  0xfc   : > { %v741_v25 = vpop.f32.mrb[1].mxu1  ;;  %v468_v31 = vrot.slane %v451_v24, %v467_v29 }
 0x166   : > { %v458_v34 = vpop.permute.xlu0 %457 }
 0x167   : > { %v469_v35 = vadd.f32 %v468_v31, %v458_v34 }
 0x169   : > { %v471_v36 = vmul.f32 0.2, %v469_v35 }
 0x16a   : > { %v463_v39 = vpop.permute.xlu0 %462 }
 0x16b   : > { %v473_v40 = vmax.f32 %v469_v35, %v471_v36  ;;  %v470_v41 = vadd.f32 %v468_v31, %v463_v39 }
 0x16d   : > { %v472_v42 = vmul.f32 0.2, %v470_v41  ;;  %v479_v43 = vsub.f32 %v257_v37, %v473_v40 }
 0x16f   : > { %v474_v45 = vmax.f32 %v470_v41, %v472_v42  ;;  %v482_v46 = vsel %vm481_vm6, %v479_v43, -inf }
 0x170   : > { %483 = vmax.xlane.f32.xlu1 %v482_v46 }
 0x171   : > { %v480_v47 = vsub.f32 %v258_v44, %v474_v45 }
 0x173   : > { %v485_v48 = vsel %vm481_vm6, %v480_v47, -inf }
 0x174   : > { %486 = vmax.xlane.f32.xlu1 %v485_v48 }
 0x1fd   : > { %v484_v49 = vpop.xlane.xlu1 %483 }
 0x1fe   : > { %v488_v50 = vsub.f32 %v479_v43, %v484_v49 }
 0x200   : > { %v490_v51 = vmul.f32 1.442695, %v488_v50 }
 0x201   : > { %v487_v52 = vpop.xlane.xlu1 %486 }
 0x202   : > { %v489_v53 = vsub.f32 %v480_v47, %v487_v52  ;;  %793 = vpow2.f32 %v490_v51 }
 0x204   : > { %v492_v54 = vmul.f32 1.442695, %v489_v53 }
 0x206   : > { %795 = vpow2.f32 %v492_v54 }
 0x20c   : > { %v794_v55 = vpop.eup %793 }
 0x210   : > { %v796_v56 = vpop.eup %795 }
 0x211   : > { %v494_v57 = vpack.c.bf16 %v796_v56, %v794_v55 }
 0x213   : > { %751 = vmatmul.mubr.msk.bf16.vlgmr.msra.gmra.mrb[4].mxu0 %vm481_vm6, %v494_v57 }
 0x2e6   : > { %v532_v59 = vpop.f32.mrb[4].mxu0 }
 0x2e7   : > { %v539_v60 = vmax.f32 %v532_v59, 1e-20  ;;  %v752_v61 = vpop.f32.mrb[5].mxu0 }
 0x2e8   : > { %v535_v62 = vpop.f32.mrb[6].mxu0 }
 0x2e9   : > { %797 = vrcp.f32 %v539_v60  ;;  %v540_v63 = vmax.f32 %v535_v62, 1e-20  ;;  %v753_v0 = vpop.f32.mrb[7].mxu0 }
 0x2eb   : > { %799 = vrcp.f32 %v540_v63 }
 0x2f3   : > { %v798_v1 = vpop.eup %797 }
 0x2f4   : > { %545 = vperm.xlu0 %791, %v798_v1  }
 0x2f5   : > { %v800_v2 = vpop.eup %799 }
 0x2f6   : > { %550 = vperm.xlu1 %792, %v800_v2  }
 0x373   : > { %v546_v3 = vpop.permute.xlu0 %545 }
 0x374   : > { %v553_v4 = vmul.f32 %v546_v3, %v532_v59 }
 0x375   : > { %v551_v5 = vpop.permute.xlu1 %550 }
 0x376   : > { %v557_v6 = vmin.f32 %v553_v4, 0.0  ;;  %v554_v7 = vmul.f32 %v551_v5, %v535_v62  ;;  %vm555_vm8 = vcmp.gt.f32.partialorder %v553_v4, 0.0 }
 0x378   : > { %v559_v8 = vmul.f32 1.442695, %v557_v6  ;;  %v558_v9 = vmin.f32 %v554_v7, 0.0  ;;  %vm556_vm9 = vcmp.gt.f32.partialorder %v554_v7, 0.0 }
 0x37a   : > { %801 = vpow2.f32 %v559_v8  ;;  %v561_v10 = vmul.f32 1.442695, %v558_v9 }
 0x37c   : > { %803 = vpow2.f32 %v561_v10 }
 0x384   : > { %v802_v11 = vpop.eup %801 }
 0x385   : > { %v690_v12 = vadd.f32 -1.0, %v802_v11 }
 0x386   : > { %v804_v13 = vpop.eup %803 }
 0x387   : > { %v565_v14 = vsel %vm555_vm8, %v553_v4, %v690_v12  ;;  %v691_v15 = vadd.f32 -1.0, %v804_v13 }
 0x388   : > { %v568_v16 = vsel %vm567_vm7, %v565_v14, -inf }
 0x389   : > { %569 = vmax.xlane.f32.xlu0 %v568_v16  ;;  %v566_v17 = vsel %vm556_vm9, %v554_v7, %v691_v15 }
 0x38a   : > { %v571_v18 = vsel %vm567_vm7, %v566_v17, -inf }
 0x38b   : > { %572 = vmax.xlane.f32.xlu1 %v571_v18 }
 0x416   : > { %v570_v19 = vpop.xlane.xlu0 %569 }
 0x417   : > { %v574_v20 = vsub.f32 %v565_v14, %v570_v19 }
 0x418   : > { %v573_v21 = vpop.xlane.xlu1 %572 }
 0x419   : > { %v576_v22 = vmul.f32 1.442695, %v574_v20  ;;  %v575_v23 = vsub.f32 %v566_v17, %v573_v21 }
 0x41b   : > { %805 = vpow2.f32 %v576_v22  ;;  %v578_v24 = vmul.f32 1.442695, %v575_v23 }
 0x41d   : > { %807 = vpow2.f32 %v578_v24 }
 0x425   : > { %v806_v25 = vpop.eup %805 }
 0x426   : > { %v580_v26 = vsel %vm567_vm7, %v806_v25, 0.0 }
 0x427   : > { %v808_v27 = vpop.eup %807  ;;  %581 = vadd.xlane.f32.xlu0 %v580_v26 }
 0x428   : > { %v583_v28 = vsel %vm567_vm7, %v808_v27, 0.0 }
 0x42b   : > { %584 = vadd.xlane.f32.xlu0 %v583_v28 }
 0x4b4   : > { %v582_v29 = vpop.xlane.xlu0 %581 }
 0x4b5   : > { %809 = vlog2.f32 %v582_v29 }
 0x4b8   : > { %v585_v30 = vpop.xlane.xlu0 %584 }
 0x4b9   : > { %811 = vlog2.f32 %v585_v30 }
 0x4bf   : > { %v810_v31 = vpop.eup %809 }
 0x4c0   : > { %v587_v32 = vmul.f32 0.6931472, %v810_v31 }
 0x4c2   : > { %v590_v33 = vadd.f32 %v587_v32, %v570_v19 }
 0x4c3   : > { %v812_v34 = vpop.eup %811 }
 0x4c4   : > { %v592_v35 = vsub.f32 %v565_v14, %v590_v33  ;;  %v589_v36 = vmul.f32 0.6931472, %v812_v34 }
 0x4c6   : > { %594 = vst.msk [vmem:[%s248_s6] sm:$0xff] %vm567_vm7, %v592_v35  ;;  %v591_v37 = vadd.f32 %v589_v36, %v573_v21 }
 0x4c8   : > { %v593_v38 = vsub.f32 %v566_v17, %v591_v37 }
 0x4ca   : > { %595 = vst.msk [vmem:[%s248_s6 + $0x8] sm:$0xff] %vm567_vm7, %v593_v38 }
 0x4cb PF: > { %s15_s18 = sadd.s32 1, %s819_s18  }
 0x4cc   : > { %p12_p4 = scmp.ge.s32.totalorder %s15_s18, 6  }
 0x4ce   :  { %14 = sbr.rel (!%p12_p4) target bundleno = 1 (0x1), region = 73 }

// kernel: spgat_forward.4
= control target key start
LH: loop header
LB: loop body
LE: loop exit
PB: predicated region body
PF: predicated region fallthrough
CT: control target
= control target key end

     0   :  { %s1787_s21 = smov 0   ;;  %s2047_s0 = inlined_call_operand.vmem [shape: bf16[64,64], index: 0, kind: input, shape index: {}]   ;;  %s2048_s1 = inlined_call_operand.vmem [shape: f32[64,36], index: 1, kind: input, shape index: {}, may-alias: {1,2}]   ;;  %s2049_s2 = inlined_call_operand.vmem [shape: f32[64,36], index: 2, kind: input, shape index: {}, may-alias: {1,2}]   ;;  %s2050_s3 = inlined_call_operand.vmem [shape: f32[36,4], index: 3, kind: input, shape index: {}]   ;;  %s2051_s4 = inlined_call_operand.vmem [shape: f32[4,36], index: 4, kind: input, shape index: {}]   ;;  %s2052_s5 = inlined_call_operand.vmem [shape: f32[36,8], index: 5, kind: input, shape index: {}]   ;;  %s2053_s6 = inlined_call_operand.vmem [shape: f32[64,9], index: 6, kind: output, shape index: {}]  }
   0x1 LB: > { %s1387_s22 = sadd.s32 4294967295, %s1738_s21   ;;  %p1391_p0 = scmp.ge.s32.totalorder %s1738_s21, 1  ;;  %s1738_s21 = sphi %s1787_s21, %s16_s21  }
   0x2   : > { %p224_p1 = scmp.lt.s32.totalorder %s1738_s21, 5 }
   0x4   : > { %p225_p2 = pnand %p1391_p0, %p224_p1 }
   0x5   : > { %v305_v0 = vld [vmem:[%s2050_s3] sm:$0xff] (!%p225_p2)  ;;  %v306_v1 = vld [vmem:[%s2050_s3 + $0x8] sm:$0xff] (!%p225_p2)  ;;  %v307_v2 = vld [vmem:[%s2050_s3 + $0x10] sm:$0xff] (!%p225_p2)  ;;  %s1392_s29 = sshll.u32 (!%p225_p2), %s1387_s22, 1  ;;  %vm310_vm0 = vcmask (!%p225_p2), 293888   ;;  %v1740_v7 = vmov (!%p225_p2), 0.0|0.0   ;;  %v504_v32 = vlaneseq (!%p225_p2) }
   0x6   : > { %228 = sbr.rel (%p225_p2) target bundleno = 1572 (0x624), region = 44  ;;  %v1602_v3 = vpack.c.bf16 (!%p225_p2), %v306_v1, %v305_v0  ;;  %v308_v4 = vld [vmem:[%s2050_s3 + $0x18] sm:$0xff] (!%p225_p2)  ;;  %p260_p3 = scmp.lt.s32.totalorder (!%p225_p2), %s1392_s29, 7  ;;  %v286_v5 = vld [vmem:[%s2049_s2] sm:$0xff] (!%p225_p2)  ;;  %1610 = vmatprep.subr.bf16.mxu1 (!%p225_p2), %v1740_v7  ;;  %v287_v8 = vld [vmem:[%s2049_s2 + $0x8] sm:$0xff] (!%p225_p2)  ;;  %vm1741_vm2 = vmmov (!%p225_p2), 0  }
   0x7   : > { %v1606_v6 = vpack.c.bf16 (!%p225_p2), %v308_v4, %v307_v2  ;;  %vm1815_vm1 = vmpackc.low (!%p225_p2), %vm310_vm0, %vm310_vm0  ;;  %v1821_v10 = vpack.c.bf16 (!%p225_p2), %v287_v8, %v286_v5  ;;  %v1742_v11 = vmov (!%p225_p2), 0.0   ;;  %v309_v12 = vld [vmem:[%s2050_s3 + $0x20] sm:$0xf] (!%p225_p2)  ;;  %vm317_vm3 = vcmask (!%p225_p2), 1043456   ;;  %v288_v13 = vld [vmem:[%s2049_s2 + $0x10] sm:$0xff] (!%p225_p2)  ;;  %s1746_s15 = smov (!%p225_p2), 119  }
   0x8   : > { %1603 = vmatprep.subr.bf16.mxu0 (!%p225_p2), %v1602_v3  ;;  %1523 = vmatprep.mubr.msk.f32.mxu1 (!%p225_p2), %vm1741_vm2, %v1742_v11  ;;  %v289_v14 = vld [vmem:[%s2049_s2 + $0x18] sm:$0xff] (!%p225_p2)  ;;  %v290_v18 = vld [vmem:[%s2049_s2 + $0x20] sm:$0xff] (!%p225_p2)  ;;  %v291_v19 = vld [vmem:[%s2049_s2 + $0x28] sm:$0xff] (!%p225_p2)  ;;  %v1743_v25 = vmov (!%p225_p2), 1   ;;  %v1744_v26 = vmov (!%p225_p2), 0   ;;  %v1745_v31 = vmov (!%p225_p2), 2  }
   0x9   : > { %1605 = vmatpush3.bf16.msra.mxu0 (!%p225_p2), %v1602_v3  ;;  %1613 = vmatpush3.bf16.xpose.msk.msra.mxu1 (!%p225_p2), %vm1815_vm1, %v1821_v10  ;;  %v1844_v16 = vpack.c.bf16 (!%p225_p2), %v289_v14, %v288_v13  ;;  %v1861_v20 = vpack.c.bf16 (!%p225_p2), %v291_v19, %v290_v18  ;;  %v292_v21 = vld [vmem:[%s2049_s2 + $0x30] sm:$0xff] (!%p225_p2)  ;;  %v293_v22 = vld [vmem:[%s2049_s2 + $0x38] sm:$0xff] (!%p225_p2)  ;;  %v396_v24 = vld [vmem:[%s2051_s4] sm:$0xf] (!%p225_p2)  ;;  %v1893_v33 = vshrl.u32 (!%p225_p2), %v504_v32, 7  ;;  %vm516_vm4 = vcmask (!%p225_p2), 523264  }
   0xa   : > { %1607 = vmatprep.subr.bf16.mxu0 (!%p225_p2), %v1606_v6  ;;  %1614 = vmatprep.subr.bf16.mxu1 (!%p225_p2), %v1740_v7  ;;  %v1876_v23 = vpack.c.bf16 (!%p225_p2), %v293_v22, %v292_v21  ;;  %v1747_v5 = vmov (!%p225_p2), 3   ;;  %vm725_vm5 = vcmask (!%p225_p2), 1046528   ;;  %vm737_vm6 = vcmask (!%p225_p2), 1040384   ;;  %s1750_s23 = smov (!%p225_p2), 110   ;;  %s1751_s24 = smov (!%p225_p2), 101  }
   0xb   : > { %1677 = vset.pattern.permute.xlu1 (!%p225_p2), %v1743_v25  ;;  %1676 = vset.pattern.permute.xlu0 (!%p225_p2), %v1744_v26  ;;  %v506_v34 = vsub.s32 (!%p225_p2), 0, %v1893_v33  ;;  %v612_v36 = vsub.s32 (!%p225_p2), 1, %v1893_v33  ;;  %v908_v19 = vsub.s32 (!%p225_p2), 2, %v1893_v33  ;;  %vm1749_vm7 = vmmov (!%p225_p2), 1  }
   0xc   : > { %vm1968_vm8 = vmpackc.low (!%p225_p2), %vm737_vm6, %vm1749_vm7  ;;  %vm730_vm9 = vcmask (!%p225_p2), 72704   ;;  %vm1016_vm14 = vcmask (!%p225_p2), 1045504   ;;  %vm1224_vm15 = vcmask (!%p225_p2), 1044480  }
   0xd   : > { %s2059_s29 = smov (!%p260_p3, %s1392_s29), 7  ;;  %1609 = vmatpush3.bf16.msra.mxu0 %v1606_v6 }
   0xe   : > { %s1395_s12 = sshll.u32 %s2059_s29, 3  ;;  %1502 = vmatprep.subr.msk.mxu0 %vm317_vm3, %v309_v12  ;;  %s1393_s10 = sshll.u32 %s2059_s29, 2 }
   0xf   : > { %s269_s17 = scalar_lea.vmem %s2048_s1, %s1395_s12  ;;  %s263_s14 = scalar_lea.vmem %s2047_s0, %s1393_s10 }
  0x10   : > { %v294_v15 = vld [vmem:[%s269_s17] sm:$0xff]  ;;  %v295_v17 = vld [vmem:[%s269_s17 + $0x8] sm:$0xff]  ;;  %s275_s8 = scalar_lea.vmem %s2053_s6, %s1395_s12 }
  0x11   : > { %1504 = vmatprep.mubr.msk.f32.mxu0 %vm310_vm0, %v294_v15  ;;  %1503 = vmatpush3.msk.msra.mxu0 %vm317_vm3, %v309_v12  ;;  %v1439_v35 = vld [vmem:[%s263_s14] sm:$0xff]  }
  0x12   : > { %1505 = vmatmul.mubr.msk.f32.vlgmr.msra.gmra.mrb[0].mxu0 %vm310_vm0, %v295_v17  ;;  %1617 = vmatpush3.bf16.xpose.msk.msra.mxu1 %vm1815_vm1, %v1844_v16  ;;  %v1441_v38 = vunpack.c.h.bf16 %v1439_v35  ;;  %v1440_v39 = vunpack.c.l.bf16 %v1439_v35 }
  0x13   : > { %1618 = vmatprep.subr.bf16.mxu1 %v1740_v7  ;;  %1526 = vmatprep.subr.bf16.mxu0 %v1742_v11 }
  0x14   : > { %1527 = vmatpush3.bf16.msra.mxu0 %v1821_v10  ;;  %1534 = vmatprep.mubr.msk.bf16.mxu0 %vm1741_vm2, %v1742_v11  ;;  %v1399_v44 = vadd.f32 -1.0, %v1441_v38  ;;  %v1398_v45 = vadd.f32 -1.0, %v1440_v39 }
  0x15   : > { %1528 = vmatprep.subr.bf16.mxu0 %v1742_v11 }
  0x16   : > { %v1903_v52 = vmul.f32 1e+30, %v1399_v44  ;;  %v1905_v55 = vmul.f32 1e+30, %v1398_v45 }
  0x18   : > { %1529 = vmatpush3.bf16.msra.mxu0 %v1844_v16 }
  0x19   : > { %1530 = vmatprep.subr.bf16.mxu0 %v1742_v11 }
  0x1a   : > { %1621 = vmatpush3.bf16.xpose.msk.msra.mxu1 %vm1815_vm1, %v1861_v20 }
  0x1b   : > { %1622 = vmatprep.subr.bf16.mxu1 %v1740_v7 }
  0x1c   : > { %1531 = vmatpush3.bf16.msra.mxu0 %v1861_v20 }
  0x1d   : > { %1532 = vmatprep.subr.bf16.mxu0 %v1742_v11 }
  0x20   : > { %1533 = vmatpush3.bf16.msra.mxu0 %v1876_v23 }
  0x21   : > { %1538 = vmatprep.subr.bf16.mxu0 %v1742_v11 }
  0x22   : > { %1625 = vmatpush3.bf16.xpose.msk.msra.mxu1 %vm1815_vm1, %v1876_v23 }
  0x29   : > { %1524 = vmatmul.mubr.msk.f32.vlgmr.msra.gmra.mrb[0].mxu1 %vm310_vm0, %v396_v24 }
  0xe5   : > { %v1887_v27 = vpop.f32.mrb[0].mxu0 }
  0xe6   : > { %v387_v28 = vpop.f32.mrb[1].mxu0 }
  0xe7   : > { %603 = vperm.xlu1 %1677, %v387_v28   ;;  %496 = vperm.xlu0 %1676, %v387_v28  }
  0xeb   : > { %607 = vperm.xlu1 %1677, %v1887_v27   ;;  %501 = vperm.xlu0 %1676, %v1887_v27  }
  0xef   : > { %1679 = vset.pattern.permute.xlu1 %v1745_v31  ;;  %1678 = vset.pattern.permute.xlu0 %v1745_v31 }
  0xfc   : > { %v1891_v29 = vpop.f32.mrb[0].mxu1 }
  0xfd   : > { %v1525_v30 = vpop.f32.mrb[1].mxu1  ;;  %v507_v37 = vrot.slane %v1891_v29, %v506_v34  ;;  %v613_v42 = vrot.slane %v1891_v29, %v612_v36  ;;  %v909_v25 = vrot.slane %v1891_v29, %v908_v19 }
 0x166   : > { %v604_v40 = vpop.permute.xlu1 %603  ;;  %v497_v41 = vpop.permute.xlu0 %496 }
 0x167   : > { %v508_v43 = vadd.f32 %v507_v37, %v497_v41  ;;  %v614_v48 = vadd.f32 %v613_v42, %v604_v40 }
 0x169   : > { %v510_v49 = vmul.f32 0.2, %v508_v43  ;;  %v616_v56 = vmul.f32 0.2, %v614_v48 }
 0x16a   : > { %v608_v46 = vpop.permute.xlu1 %607  ;;  %v502_v47 = vpop.permute.xlu0 %501 }
 0x16b   : > { %v615_v50 = vadd.f32 %v613_v42, %v608_v46  ;;  %v509_v51 = vadd.f32 %v507_v37, %v502_v47  ;;  %v512_v57 = vmax.f32 %v508_v43, %v510_v49  ;;  %v618_v62 = vmax.f32 %v614_v48, %v616_v56 }
 0x16c   : > { %v1748_v49 = vmov 8  }
 0x16d   : > { %v617_v53 = vmul.f32 0.2, %v615_v50  ;;  %v511_v54 = vmul.f32 0.2, %v509_v51  ;;  %v514_v1 = vsub.f32 %v1905_v55, %v512_v57  ;;  %v620_v3 = vsub.f32 %v1905_v55, %v618_v62 }
 0x16f   : > { %v619_v58 = vmax.f32 %v615_v50, %v617_v53  ;;  %v513_v59 = vmax.f32 %v509_v51, %v511_v54  ;;  %v517_v2 = vsel %vm516_vm4, %v514_v1, -inf  ;;  %v622_v4 = vsel %vm516_vm4, %v620_v3, -inf }
 0x171   : > { %v621_v60 = vsub.f32 %v1903_v52, %v619_v58  ;;  %v515_v61 = vsub.f32 %v1903_v52, %v513_v59 }
 0x173   : > { %v625_v63 = vsel %vm516_vm4, %v621_v60, -inf  ;;  %v520_v0 = vsel %vm516_vm4, %v515_v61, -inf }
 0x174   : > { %626 = vmax.xlane.f32.xlu0 %v625_v63  ;;  %521 = vmax.xlane.f32.xlu1 %v520_v0 }
 0x178   : > { %518 = vmax.xlane.f32.xlu0 %v517_v2  ;;  %v1116_v2 = vsub.s32 3, %v1893_v33  ;;  %v301_v33 = vld [vmem:[%s2052_s5 + $0x8] sm:$0xff] }
 0x17c   : > { %623 = vmax.xlane.f32.xlu0 %v622_v4  ;;  %v1117_v4 = vrot.slane %v1891_v29, %v1116_v2  ;;  %v1965_v29 = vld [vmem:[%s2052_s5 + $0x10] sm:$0xff] }
 0x185   : > { %639 = vrot.lane.b32.xlu1 %v1821_v10, %s1746_s15 }
 0x189   : > { %643 = vrot.lane.b32.xlu1 %v1861_v20, %s1746_s15 }
 0x18d   : > { %645 = vrot.lane.b32.xlu1 %v1876_v23, %s1746_s15 }
 0x191   : > { %903 = vperm.xlu1 %1679, %v1887_v27  }
 0x192   : > { %641 = vrot.lane.b32.xlu0 %v1844_v16, %s1746_s15 }
 0x195   : > { %1680 = vset.pattern.permute.xlu1 %v1747_v5 }
 0x196   : > { %1107 = vperm.xlu1 %1680, %v387_v28   ;;  %899 = vperm.xlu0 %1678, %v387_v28  }
 0x19a   : > { %1681 = vset.pattern.permute.xlu0 %v1747_v5  ;;  %1683 = vset.pattern.permute.xlu1 %v1748_v49 }
 0x19b   : > { %1111 = vperm.xlu0 %1681, %v1887_v27  }
 0x19f   : > { %1682 = vset.pattern.permute.xlu0 %v1748_v49 }
 0x201   : > { %v627_v6 = vpop.xlane.xlu0 %626  ;;  %v522_v7 = vpop.xlane.xlu1 %521 }
 0x202   : > { %v524_v8 = vsub.f32 %v515_v61, %v522_v7  ;;  %v629_v27 = vsub.f32 %v621_v60, %v627_v6 }
 0x204   : > { %v527_v9 = vmul.f32 1.442695, %v524_v8  ;;  %v632_v37 = vmul.f32 1.442695, %v629_v27 }
 0x205   : > { %v640_v12 = vpop.permute.xlu1 %639  ;;  %v519_v13 = vpop.xlane.xlu0 %518 }
 0x206   : > { %v523_v14 = vsub.f32 %v514_v1, %v519_v13  ;;  %1684 = vpow2.f32 %v527_v9 }
 0x208   : > { %v525_v15 = vmul.f32 1.442695, %v523_v14  ;;  %v726_v14 = vrot.slane %v301_v33, 1 }
 0x209   : > { %v644_v17 = vpop.permute.xlu1 %643  ;;  %v624_v18 = vpop.xlane.xlu0 %623 }
 0x20a   : > { %1686 = vpow2.f32 %v525_v15  ;;  %v628_v24 = vsub.f32 %v620_v3, %v624_v18  ;;  %v727_v15 = vrot.slane %v1965_v29, 1 }
 0x20c   : > { %v630_v32 = vmul.f32 1.442695, %v628_v24 }
 0x20d   : > { %v646_v21 = vpop.permute.xlu1 %645  ;;  %v642_v22 = vpop.permute.xlu0 %641 }
 0x20e   : > { %1688 = vpow2.f32 %v630_v32 }
 0x20f   : > { %1690 = vpow2.f32 %v632_v37 }
 0x210   : > { %v1685_v30 = vpop.eup %1684 }
 0x211   : > { %v904_v26 = vpop.permute.xlu1 %903 }
 0x212   : > { %v911_v28 = vadd.f32 %v909_v25, %v904_v26 }
 0x214   : > { %v1687_v31 = vpop.eup %1686  ;;  %v913_v34 = vmul.f32 0.2, %v911_v28 }
 0x215   : > { %v900_v35 = vpop.permute.xlu0 %899  ;;  %v529_v36 = vpack.c.bf16 %v1685_v30, %v1687_v31  ;;  %v1108_v3 = vpop.permute.xlu1 %1107 }
 0x216   : > { %v915_v38 = vmax.f32 %v911_v28, %v913_v34  ;;  %v910_v39 = vadd.f32 %v909_v25, %v900_v35  ;;  %v1118_v5 = vadd.f32 %v1117_v4, %v1108_v3 }
 0x217   : > { %1535 = vmatmul.mubr.msk.bf16.vlgmr.msra.gmra.mrb[4].mxu0 %vm516_vm4, %v529_v36 }
 0x218   : > { %v912_v40 = vmul.f32 0.2, %v910_v39  ;;  %1539 = vmatpush3.bf16.msra.mxu0 %v640_v12  ;;  %v1925_v41 = vsub.f32 %v1903_v52, %v915_v38  ;;  %1546 = vmatprep.mubr.msk.bf16.mxu0 %vm1741_vm2, %v1742_v11  ;;  %v1689_v46 = vpop.eup %1688  ;;  %v1120_v7 = vmul.f32 0.2, %v1118_v5 }
 0x219   : > { %1540 = vmatprep.subr.bf16.mxu0 %v1742_v11  ;;  %v1691_v47 = vpop.eup %1690 }
 0x21a   : > { %v914_v42 = vmax.f32 %v910_v39, %v912_v40  ;;  %v921_v43 = vsel %vm516_vm4, %v1925_v41, -inf  ;;  %v634_v48 = vpack.c.bf16 %v1691_v47, %v1689_v46  ;;  %v1122_v9 = vmax.f32 %v1118_v5, %v1120_v7  ;;  %v1112_v19 = vpop.permute.xlu0 %1111 }
 0x21b   : > { %922 = vmax.xlane.f32.xlu0 %v921_v43 }
 0x21c   : > { %1541 = vmatpush3.bf16.msra.mxu0 %v642_v22  ;;  %v1933_v44 = vsub.f32 %v1905_v55, %v914_v42  ;;  %v1955_v12 = vsub.f32 %v1905_v55, %v1122_v9  ;;  %v300_v22 = vld [vmem:[%s2052_s5] sm:$0xff] }
 0x21d   : > { %1542 = vmatprep.subr.bf16.mxu0 %v1742_v11  ;;  %v1632_v24 = vpack.c.bf16 %v301_v33, %v300_v22 }
 0x21e   : > { %v918_v45 = vsel %vm516_vm4, %v1933_v44, -inf  ;;  %v1126_v13 = vsel %vm516_vm4, %v1955_v12, -inf }
 0x21f   : > { %919 = vmax.xlane.f32.xlu1 %v918_v45 }
 0x220   : > { %1543 = vmatpush3.bf16.msra.mxu0 %v644_v17  ;;  %v728_v17 = vsel %vm725_vm5, %v726_v14, %v727_v15 }
 0x221   : > { %1544 = vmatprep.subr.bf16.mxu0 %v1742_v11  ;;  %v1626_v55 = vpack.c.bf16 %v727_v15, %v728_v17 }
 0x223   : > { %1628 = vmatprep.subr.msk.bf16.mxu1 %vm1968_vm8, %v1626_v55 }
 0x224   : > { %1545 = vmatpush3.bf16.msra.mxu0 %v646_v21  ;;  %1631 = vmatpush3.bf16.msk.msra.mxu1 %vm1968_vm8, %v1626_v55  ;;  %v1119_v21 = vadd.f32 %v1117_v4, %v1112_v19 }
 0x225   : > { %1583 = vmatprep.subr.bf16.mxu0 %v1742_v11  ;;  %1634 = vmatprep.subr.msk.bf16.mxu1 %vm1968_vm8, %v1632_v24 }
 0x226   : > { %v1121_v25 = vmul.f32 0.2, %v1119_v21 }
 0x227   : > { %1547 = vmatmul.mubr.msk.bf16.vlgmr.msra.gmra.mrb[8].mxu0 %vm516_vm4, %v634_v48 }
 0x228   : > { %1591 = vmatprep.mubr.msk.bf16.mxu0 %vm1741_vm2, %v1742_v11  ;;  %v1123_v26 = vmax.f32 %v1119_v21, %v1121_v25 }
 0x22a   : > { %v1982_v27 = vsub.f32 %v1903_v52, %v1123_v26 }
 0x22c   : > { %v1129_v28 = vsel %vm516_vm4, %v1982_v27, -inf }
 0x2a8   : > { %v923_v52 = vpop.xlane.xlu0 %922 }
 0x2ac   : > { %v920_v30 = vpop.xlane.xlu1 %919 }
 0x2ea   : > { %v1943_v50 = vpop.f32.mrb[4].mxu0 }
 0x2eb   : > { %v574_v51 = vmax.f32 %v1943_v50, 1e-20  ;;  %v1536_v53 = vpop.f32.mrb[5].mxu0 }
 0x2ec   : > { %v1946_v54 = vpop.f32.mrb[6].mxu0 }
 0x2ed   : > { %1692 = vrcp.f32 %v574_v51  ;;  %v575_v56 = vmax.f32 %v1946_v54, 1e-20  ;;  %v1537_v57 = vpop.f32.mrb[7].mxu0 }
 0x2ef   : > { %1694 = vrcp.f32 %v575_v56 }
 0x2f7   : > { %v1693_v58 = vpop.eup %1692 }
 0x2f8   : > { %580 = vperm.xlu0 %1682, %v1693_v58  }
 0x2f9   : > { %v1695_v59 = vpop.eup %1694 }
 0x2fa   : > { %v688_v60 = vpop.f32.mrb[8].mxu0  ;;  %585 = vperm.xlu1 %1683, %v1695_v59  }
 0x2fb   : > { %v695_v61 = vmax.f32 %v688_v60, 1e-20  ;;  %v1548_v62 = vpop.f32.mrb[9].mxu0 }
 0x2fc   : > { %v1949_v63 = vpop.f32.mrb[10].mxu0  ;;  %v924_v62 = vsub.f32 %v1933_v44, %v920_v30 }
 0x2fd   : > { %1696 = vrcp.f32 %v695_v61  ;;  %v696_v0 = vmax.f32 %v1949_v63, 1e-20  ;;  %v1549_v1 = vpop.f32.mrb[11].mxu0 }
 0x2fe   : > { %v926_v1 = vmul.f32 1.442695, %v924_v62 }
 0x2ff   : > { %1698 = vrcp.f32 %v696_v0 }
 0x307   : > { %v1697_v6 = vpop.eup %1696 }
 0x308   : > { %701 = vperm.xlu1 %1683, %v1697_v6  }
 0x309   : > { %v1699_v8 = vpop.eup %1698 }
 0x30c   : > { %706 = vperm.xlu1 %1683, %v1699_v8  }
 0x317   : > { %1127 = vmax.xlane.f32.xlu0 %v1126_v13 }
 0x32d   : > { %931 = vrot.lane.b32.xlu0 %v1821_v10, %s1750_s23 }
 0x330   : > { %1130 = vmax.xlane.f32.xlu1 %v1129_v28 }
 0x331   : > { %1141 = vrot.lane.b32.xlu0 %v1844_v16, %s1751_s24 }
 0x335   : > { %1143 = vrot.lane.b32.xlu0 %v1861_v20, %s1751_s24 }
 0x339   : > { %1145 = vrot.lane.b32.xlu0 %v1876_v23, %s1751_s24 }
 0x341   : > { %1139 = vrot.lane.b32.xlu1 %v1821_v10, %s1751_s24 }
 0x345   : > { %933 = vrot.lane.b32.xlu1 %v1844_v16, %s1750_s23 }
 0x349   : > { %935 = vrot.lane.b32.xlu1 %v1861_v20, %s1750_s23 }
 0x34d   : > { %937 = vrot.lane.b32.xlu1 %v1876_v23, %s1750_s23 }
 0x377   : > { %v581_v31 = vpop.permute.xlu0 %580 }
 0x378   : > { %v588_v32 = vmul.f32 %v581_v31, %v1943_v50 }
 0x379   : > { %v586_v34 = vpop.permute.xlu1 %585 }
 0x37a   : > { %v592_v35 = vmin.f32 %v588_v32, 0.0  ;;  %v589_v38 = vmul.f32 %v586_v34, %v1946_v54  ;;  %vm590_vm12 = vcmp.gt.f32.partialorder %v588_v32, 0.0 }
 0x37c   : > { %v594_v40 = vmul.f32 1.442695, %v592_v35  ;;  %v593_v20 = vmin.f32 %v589_v38, 0.0  ;;  %vm591_vm13 = vcmp.gt.f32.partialorder %v589_v38, 0.0 }
 0x37e   : > { %v596_v45 = vmul.f32 1.442695, %v593_v20 }
 0x387   : > { %v702_v36 = vpop.permute.xlu1 %701 }
 0x388   : > { %v709_v37 = vmul.f32 %v702_v36, %v688_v60 }
 0x38a   : > { %v713_v39 = vmin.f32 %v709_v37, 0.0  ;;  %vm711_vm10 = vcmp.gt.f32.partialorder %v709_v37, 0.0 }
 0x38b   : > { %v707_v10 = vpop.permute.xlu1 %706 }
 0x38c   : > { %v715_v42 = vmul.f32 1.442695, %v713_v39  ;;  %v710_v16 = vmul.f32 %v707_v10, %v1949_v63  ;;  %v925_v63 = vsub.f32 %v1925_v41, %v923_v52  ;;  %v303_v39 = vld [vmem:[%s2052_s5 + $0x18] sm:$0xff] }
 0x38d   : > { %v1018_v10 = vrot.slane %v303_v39, 2 }
 0x38e   : > { %1700 = vpow2.f32 %v715_v42  ;;  %v714_v23 = vmin.f32 %v710_v16, 0.0  ;;  %vm712_vm11 = vcmp.gt.f32.partialorder %v710_v16, 0.0  ;;  %v928_v4 = vmul.f32 1.442695, %v925_v63 }
 0x38f   : > { %1702 = vpow2.f32 %v594_v40  ;;  %v304_v40 = vld [vmem:[%s2052_s5 + $0x20] sm:$0xf]  ;;  %v1225_v42 = vrot.slane %v303_v39, 3 }
 0x390   : > { %v717_v43 = vmul.f32 1.442695, %v714_v23 }
 0x392   : > { %1704 = vpow2.f32 %v717_v43 }
 0x393   : > { %1706 = vpow2.f32 %v596_v45 }
 0x394   : > { %1708 = vpow2.f32 %v926_v1 }
 0x398   : > { %v1701_v46 = vpop.eup %1700 }
 0x399   : > { %v1703_v47 = vpop.eup %1702  ;;  %v1416_v48 = vadd.f32 -1.0, %v1701_v46 }
 0x39a   : > { %v1413_v51 = vadd.f32 -1.0, %v1703_v47 }
 0x39b   : > { %v721_v49 = vsel %vm711_vm10, %v709_v37, %v1416_v48 }
 0x39c   : > { %v1705_v50 = vpop.eup %1704  ;;  %1554 = vmatprep.mubr.msk.f32.mxu1 %vm730_vm9, %v721_v49  ;;  %v600_v57 = vsel %vm590_vm12, %v588_v32, %v1413_v51 }
 0x39d   : > { %v1417_v53 = vadd.f32 -1.0, %v1705_v50  ;;  %v1707_v56 = vpop.eup %1706 }
 0x39e   : > { %v1414_v58 = vadd.f32 -1.0, %v1707_v56 }
 0x39f   : > { %v722_v54 = vsel %vm712_vm11, %v710_v16, %v1417_v53  ;;  %v1226_v16 = vrot.slane %v304_v40, 3 }
 0x3a0   : > { %1555 = vmatmul.mubr.msk.f32.vlgmr.msra.gmra.mrb[2].mxu1 %vm730_vm9, %v722_v54  ;;  %v601_v60 = vsel %vm591_vm13, %v589_v38, %v1414_v58  ;;  %v1017_v38 = vrot.slane %v1965_v29, 2 }
 0x3a1   : > { %1561 = vmatprep.mubr.msk.f32.mxu1 %vm730_vm9, %v600_v57  ;;  %1637 = vmatpush3.bf16.msk.msra.mxu1 %vm1968_vm8, %v1632_v24  ;;  %v1227_v23 = vsel %vm1224_vm15, %v1225_v42, %v1226_v16 }
 0x3a2   : > { %1564 = vmatprep.subr.bf16.mxu1 %v1742_v11  ;;  %v1019_v20 = vsel %vm1016_vm14, %v1017_v38, %v1018_v10  ;;  %v1644_v45 = vpack.c.bf16 %v1226_v16, %v1227_v23 }
 0x3a3   : > { %v1638_v43 = vpack.c.bf16 %v1018_v10, %v1019_v20 }
 0x3a4   : > { %v1128_v59 = vpop.xlane.xlu0 %1127 }
 0x3a5   : > { %v1132_v0 = vsub.f32 %v1955_v12, %v1128_v59  ;;  %v1709_v12 = vpop.eup %1708 }
 0x3a7   : > { %v1134_v6 = vmul.f32 1.442695, %v1132_v0 }
 0x3a8   : > { %1562 = vmatmul.mubr.msk.f32.vlgmr.msra.gmra.mrb[2].mxu1 %vm730_vm9, %v601_v60  ;;  %v932_v61 = vpop.permute.xlu0 %931 }
 0x3a9   : > { %1565 = vmatpush3.bf16.msra.mxu1 %v932_v61  ;;  %1572 = vmatprep.mubr.msk.bf16.mxu1 %vm1741_vm2, %v1742_v11 }
 0x3aa   : > { %1566 = vmatprep.subr.bf16.mxu1 %v1742_v11 }
 0x3ac   : > { %v1142_v5 = vpop.permute.xlu0 %1141 }
 0x3b0   : > { %v1144_v41 = vpop.permute.xlu0 %1143 }
 0x3b4   : > { %v1146_v13 = vpop.permute.xlu0 %1145 }
 0x3bd   : > { %v1131_v2 = vpop.xlane.xlu1 %1130 }
 0x3be   : > { %v1133_v3 = vsub.f32 %v1982_v27, %v1131_v2 }
 0x3c0   : > { %v1136_v7 = vmul.f32 1.442695, %v1133_v3 }
 0x3c1   : > { %v1140_v8 = vpop.permute.xlu1 %1139 }
 0x3c2   : > { %1710 = vpow2.f32 %v1136_v7  ;;  %1584 = vmatpush3.bf16.msra.mxu0 %v1140_v8 }
 0x3c3   : > { %1712 = vpow2.f32 %v928_v4  ;;  %1585 = vmatprep.subr.bf16.mxu0 %v1742_v11 }
 0x3c4   : > { %1714 = vpow2.f32 %v1134_v6 }
 0x3c5   : > { %v934_v44 = vpop.permute.xlu1 %933 }
 0x3c6   : > { %1567 = vmatpush3.bf16.msra.mxu1 %v934_v44  ;;  %1586 = vmatpush3.bf16.msra.mxu0 %v1142_v5 }
 0x3c7   : > { %1568 = vmatprep.subr.bf16.mxu1 %v1742_v11  ;;  %1587 = vmatprep.subr.bf16.mxu0 %v1742_v11 }
 0x3c9   : > { %v936_v9 = vpop.permute.xlu1 %935 }
 0x3ca   : > { %1569 = vmatpush3.bf16.msra.mxu1 %v936_v9  ;;  %1588 = vmatpush3.bf16.msra.mxu0 %v1144_v41 }
 0x3cb   : > { %1570 = vmatprep.subr.bf16.mxu1 %v1742_v11  ;;  %1589 = vmatprep.subr.bf16.mxu0 %v1742_v11 }
 0x3cc   : > { %v1711_v33 = vpop.eup %1710 }
 0x3cd   : > { %v1713_v14 = vpop.eup %1712  ;;  %v938_v15 = vpop.permute.xlu1 %937 }
 0x3ce   : > { %v1715_v17 = vpop.eup %1714  ;;  %1571 = vmatpush3.bf16.msra.mxu1 %v938_v15  ;;  %1590 = vmatpush3.bf16.msra.mxu0 %v1146_v13  ;;  %v930_v55 = vpack.c.bf16 %v1713_v14, %v1709_v12 }
 0x3cf   : > { %v1138_v19 = vpack.c.bf16 %v1711_v33, %v1715_v17  ;;  %1640 = vmatprep.subr.msk.bf16.mxu1 %vm1968_vm8, %v1638_v43  ;;  %1646 = vmatprep.subr.msk.bf16.mxu0 %vm1968_vm8, %v1644_v45 }
 0x3d1   : > { %1573 = vmatmul.mubr.msk.bf16.vlgmr.msra.gmra.mrb[4].mxu1 %vm516_vm4, %v930_v55  ;;  %1592 = vmatmul.mubr.msk.bf16.vlgmr.msra.gmra.mrb[12].mxu0 %vm516_vm4, %v1138_v19  ;;  %vm1314_vm4 = vcmask 64512  }
 0x3d2   : > { %1643 = vmatpush3.bf16.msk.msra.mxu1 %vm1968_vm8, %v1638_v43  ;;  %1649 = vmatpush3.bf16.msk.msra.mxu0 %vm1968_vm8, %v1644_v45 }
 0x4a4   : > { %v980_v21 = vpop.f32.mrb[4].mxu1  ;;  %v1188_v22 = vpop.f32.mrb[12].mxu0 }
 0x4a5   : > { %v987_v24 = vmax.f32 %v980_v21, 1e-20  ;;  %v1195_v25 = vmax.f32 %v1188_v22, 1e-20  ;;  %v1574_v26 = vpop.f32.mrb[5].mxu1  ;;  %v1593_v27 = vpop.f32.mrb[13].mxu0 }
 0x4a6   : > { %v983_v11 = vpop.f32.mrb[6].mxu1  ;;  %v1191_v28 = vpop.f32.mrb[14].mxu0 }
 0x4a7   : > { %1716 = vrcp.f32 %v987_v24  ;;  %v988_v52 = vmax.f32 %v983_v11, 1e-20  ;;  %v1575_v30 = vpop.f32.mrb[7].mxu1  ;;  %v1594_v31 = vpop.f32.mrb[15].mxu0  ;;  %v1196_v32 = vmax.f32 %v1191_v28, 1e-20 }
 0x4a8   : > { %1718 = vrcp.f32 %v1195_v25 }
 0x4a9   : > { %1720 = vrcp.f32 %v988_v52 }
 0x4aa   : > { %1722 = vrcp.f32 %v1196_v32 }
 0x4b1   : > { %v1717_v34 = vpop.eup %1716 }
 0x4b2   : > { %v1719_v35 = vpop.eup %1718  ;;  %993 = vperm.xlu1 %1683, %v1717_v34  }
 0x4b3   : > { %1201 = vperm.xlu0 %1682, %v1719_v35   ;;  %v1721_v36 = vpop.eup %1720 }
 0x4b4   : > { %v1723_v37 = vpop.eup %1722 }
 0x4b6   : > { %998 = vperm.xlu1 %1683, %v1721_v36  }
 0x4b7   : > { %1206 = vperm.xlu0 %1682, %v1723_v37  }
 0x531   : > { %v994_v29 = vpop.permute.xlu1 %993 }
 0x532   : > { %v1001_v46 = vmul.f32 %v994_v29, %v980_v21  ;;  %v1202_v47 = vpop.permute.xlu0 %1201 }
 0x533   : > { %v1209_v48 = vmul.f32 %v1202_v47, %v1188_v22 }
 0x534   : > { %v1005_v49 = vmin.f32 %v1001_v46, 0.0  ;;  %vm1003_vm0 = vcmp.gt.f32.partialorder %v1001_v46, 0.0 }
 0x535   : > { %v1213_v50 = vmin.f32 %v1209_v48, 0.0  ;;  %v999_v51 = vpop.permute.xlu1 %998  ;;  %vm1211_vm1 = vcmp.gt.f32.partialorder %v1209_v48, 0.0 }
 0x536   : > { %v1007_v53 = vmul.f32 1.442695, %v1005_v49  ;;  %v1002_v54 = vmul.f32 %v999_v51, %v983_v11  ;;  %v1207_v56 = vpop.permute.xlu0 %1206 }
 0x537   : > { %v1215_v57 = vmul.f32 1.442695, %v1213_v50  ;;  %v1210_v58 = vmul.f32 %v1207_v56, %v1191_v28 }
 0x538   : > { %1724 = vpow2.f32 %v1007_v53  ;;  %v1006_v59 = vmin.f32 %v1002_v54, 0.0  ;;  %vm1004_vm2 = vcmp.gt.f32.partialorder %v1002_v54, 0.0 }
 0x539   : > { %1726 = vpow2.f32 %v1215_v57  ;;  %v1214_v60 = vmin.f32 %v1210_v58, 0.0  ;;  %vm1212_vm3 = vcmp.gt.f32.partialorder %v1210_v58, 0.0 }
 0x53a   : > { %v1009_v61 = vmul.f32 1.442695, %v1006_v59 }
 0x53b   : > { %v1217_v62 = vmul.f32 1.442695, %v1214_v60 }
 0x53c   : > { %1728 = vpow2.f32 %v1009_v61 }
 0x53d   : > { %1730 = vpow2.f32 %v1217_v62 }
 0x542   : > { %v1725_v18 = vpop.eup %1724 }
 0x543   : > { %v1727_v63 = vpop.eup %1726  ;;  %v1425_v0 = vadd.f32 -1.0, %v1725_v18 }
 0x544   : > { %v1431_v1 = vadd.f32 -1.0, %v1727_v63 }
 0x545   : > { %v1013_v2 = vsel %vm1003_vm0, %v1001_v46, %v1425_v0 }
 0x546   : > { %v1729_v3 = vpop.eup %1728  ;;  %1580 = vmatprep.mubr.msk.f32.mxu1 %vm730_vm9, %v1013_v2  ;;  %v1221_v4 = vsel %vm1211_vm1, %v1209_v48, %v1431_v1 }
 0x547   : > { %v1731_v5 = vpop.eup %1730  ;;  %v1426_v6 = vadd.f32 -1.0, %v1729_v3  ;;  %1599 = vmatprep.mubr.msk.f32.mxu0 %vm730_vm9, %v1221_v4 }
 0x548   : > { %v1432_v7 = vadd.f32 -1.0, %v1731_v5 }
 0x549   : > { %v1014_v8 = vsel %vm1004_vm2, %v1002_v54, %v1426_v6 }
 0x54a   : > { %v1222_v44 = vsel %vm1212_vm3, %v1210_v58, %v1432_v7  ;;  %1581 = vmatmul.mubr.msk.f32.vlgmr.msra.gmra.mrb[2].mxu1 %vm730_vm9, %v1014_v8 }
 0x54b   : > { %1600 = vmatmul.mubr.msk.f32.vlgmr.msra.gmra.mrb[2].mxu0 %vm730_vm9, %v1222_v44 }
 0x61d   : > { %v1582_v41 = vpop.f32.mrb[2].mxu1 }
 0x61e   : > { %v1601_v9 = vpop.f32.mrb[2].mxu0  ;;  %v1095_v12 = vpop.f32.mrb[3].mxu1 }
 0x61f   : > { %v1650_v13 = vadd.f32 %v1601_v9, %v1582_v41  ;;  %v1303_v33 = vpop.f32.mrb[3].mxu0 }
 0x620   : > { %v1651_v14 = vadd.f32 %v1303_v33, %v1095_v12 }
 0x621   : > { %v1316_v17 = vsel %vm1314_vm4, %v1650_v13, 1.0 }
 0x622   : > { %v1315_v15 = vsel %vm1314_vm4, %v1651_v14, 1.0  ;;  %1318 = vst.msk [vmem:[%s275_s8 + $0x8] sm:$0xff] %vm730_vm9, %v1316_v17 }
 0x623   : > { %1317 = vst.msk [vmem:[%s275_s8] sm:$0xff] %vm730_vm9, %v1315_v15 }
 0x624 PF: > { %s16_s21 = sadd.s32 1, %s1738_s21  }
 0x625   : > { %p13_p4 = scmp.ge.s32.totalorder %s16_s21, 6  }
 0x627   :  { %15 = sbr.rel (!%p13_p4) target bundleno = 1 (0x1), region = 77 }

</bundles_post_ra>
